<compile_context>
chip_gen: v5e
topology: v5e:2x2
jax: 0.10.0
libtpu: 0.0.40
codegen_flags: <defaults>
</compile_context>

<pallas_src>
import functools

import jax
import jax.numpy as jnp
from jax import lax
from jax.experimental import pallas as pl
from jax.experimental.pallas import tpu as pltpu


def basic_block_kernel(x_ref, w1_ref, s1_ref, b1_ref, w2_ref, s2_ref, b2_ref,
                       mask_ref, o_ref, pad_ref, *, D, H, W, margin):
    """Fused BasicBlock for one sample, (Cout, Lw) compute orientation.

    x_ref   : (1, C, Lw)        lane-dense sample in wide-row layout,
                                Lw = D*(H+2)*(W+2), H/W borders already zero
    w*_ref  : (9, Cout, 3*Cin)  weights grouped per (kd, kh); col = kw*Cin+ci
    s*/b*   : (Cout, 1)         folded BatchNorm scale / bias (lane-broadcast)
    mask_ref: (1, Lw)           1.0 at valid positions, 0.0 at H/W halo lanes
    o_ref   : (1, Cout, Lw)     output in the same wide-row layout
    pad_ref : (C, margin+Lw+margin)  zero-margined lane-dense staging buffer
    """
    C = x_ref.shape[1]
    Qd = (H + 2) * (W + 2)           # one depth-slab in the wide-row layout
    Lw = D * Qd
    base = margin

    s1 = s1_ref[...]
    b1 = b1_ref[...]
    s2 = s2_ref[...]
    b2 = b2_ref[...]
    mask = mask_ref[...]

    # Zero only the two depth-halo margins (cheap, megacore-safe); the data
    # region [base, base+Lw) is fully overwritten below.
    pad_ref[:, 0:base] = jnp.zeros((C, base), jnp.float32)
    pad_ref[:, base + Lw:base + Lw + margin] = jnp.zeros((C, margin),
                                                         jnp.float32)

    x_wide = x_ref[0]                                  # (C, Lw), no transpose
    pad_ref[:, base:base + Lw] = x_wide                # one full-width store

    def conv3x3x3(w_ref):
        # Tap-group accumulation: 9 matmuls with K = 3*Cin.  The MXU result is
        # already (Cout, Lw) lane-dense, so no output transpose is needed.
        Cout = w_ref.shape[1]
        acc = jnp.zeros((Cout, Lw), jnp.float32)
        for kd in range(3):
            for kh in range(3):
                g = kd * 3 + kh
                s = base + (kd - 1) * Qd + (kh - 1) * (W + 2)
                xg = jnp.concatenate(
                    [pad_ref[:, s - 1:s - 1 + Lw],     # kw = 0
                     pad_ref[:, s:s + Lw],             # kw = 1
                     pad_ref[:, s + 1:s + 1 + Lw]],    # kw = 2
                    axis=0)                            # (3*Cin, Lw)
                acc = acc + jnp.dot(w_ref[g], xg,
                                    preferred_element_type=jnp.float32)
        return acc

    # ---- conv1 + BN1 + ReLU ----
    # The mask zeroes the H/W-halo lanes (which hold garbage conv outputs) so
    # they act as conv2's zero padding; the restage is one full-width store.
    y1 = jnp.maximum(conv3x3x3(w1_ref) * s1 + b1, 0.0) * mask
    pad_ref[:, base:base + Lw] = y1

    # ---- conv2 + BN2 + residual + ReLU ----
    # Halo lanes carry garbage here; the wrapper crops them away.
    y2 = conv3x3x3(w2_ref) * s2 + b2
    o_ref[0] = jnp.maximum(y2 + x_wide, 0.0)


@jax.jit
def basic_block(x_ncdhw, w1, gamma1, beta1, w2, gamma2, beta2):
    """BasicBlock forward.  x_ncdhw: (N, C, D, H, W) like PyTorch."""
    eps = 1e-5
    N, Cin, D, H, W = x_ncdhw.shape
    Cout = w1.shape[-1]
    # Residual add with downsample=None / stride=1 requires inplanes == planes.
    assert Cin == Cout == w2.shape[-2] == w2.shape[-1], \
        "BasicBlock with downsample=None needs inplanes == planes"

    # Inference-mode BN (running_mean=0, running_var=1) folded to (C, 1)
    # scale / bias so the kernel does a single lane-broadcast FMA per conv.
    s1 = (gamma1 / jnp.sqrt(1.0 + eps)).reshape(-1, 1).astype(jnp.float32)
    b1 = beta1.reshape(-1, 1).astype(jnp.float32)
    s2 = (gamma2 / jnp.sqrt(1.0 + eps)).reshape(-1, 1).astype(jnp.float32)
    b2 = beta2.reshape(-1, 1).astype(jnp.float32)

    # Pack weights (kd,kh,kw,ci,co) -> (g=kd*3+kh, co, kw*Cin+ci): one
    # (Cout, 3*Cin) slab per tap group, matching the kernel's grouped matmuls.
    w1p = jnp.transpose(w1.astype(jnp.float32),
                        (0, 1, 4, 2, 3)).reshape(9, Cout, 3 * Cin)
    w2p = jnp.transpose(w2.astype(jnp.float32),
                        (0, 1, 4, 2, 3)).reshape(9, Cout, 3 * Cout)

    Qd = (H + 2) * (W + 2)
    Lw = D * Qd
    # Depth-halo margin covering the largest tap offset, rounded to 128 lanes.
    margin = -(-(Qd + W + 3) // 128) * 128
    S = Lw + 2 * margin

    # Wide-row layout: H/W zero-padded (D handled by the in-kernel margins),
    # flattened per sample so the kernel's last dim is large and lane-dense.
    x_wide = jnp.pad(x_ncdhw.astype(jnp.float32),
                     ((0, 0), (0, 0), (0, 0), (1, 1), (1, 1)))
    x_wide = x_wide.reshape(N, Cin, Lw)

    # 1.0 at valid positions, 0.0 at the in-slab H/W halo lanes.
    mask = jnp.pad(jnp.ones((1, D, H, W), jnp.float32),
                   ((0, 0), (0, 0), (1, 1), (1, 1))).reshape(1, Lw)

    kernel = functools.partial(basic_block_kernel, D=D, H=H, W=W,
                               margin=margin)

    out_wide = pl.pallas_call(
        kernel,
        out_shape=jax.ShapeDtypeStruct((N, Cout, Lw), jnp.float32),
        grid=(N,),
        in_specs=[
            pl.BlockSpec((1, Cin, Lw), lambda n: (n, 0, 0)),
            pl.BlockSpec((9, Cout, 3 * Cin), lambda n: (0, 0, 0)),
            pl.BlockSpec((Cout, 1), lambda n: (0, 0)),
            pl.BlockSpec((Cout, 1), lambda n: (0, 0)),
            pl.BlockSpec((9, Cout, 3 * Cout), lambda n: (0, 0, 0)),
            pl.BlockSpec((Cout, 1), lambda n: (0, 0)),
            pl.BlockSpec((Cout, 1), lambda n: (0, 0)),
            pl.BlockSpec((1, Lw), lambda n: (0, 0)),
        ],
        out_specs=pl.BlockSpec((1, Cout, Lw), lambda n: (n, 0, 0)),
        scratch_shapes=[pltpu.VMEM((Cin, S), jnp.float32)],
        # TODO(synk): at real sizes add a halo-aware D-tile grid axis and set
        #             vmem_limit_bytes per generation (v7x 64 MiB physical).
        compiler_params=pltpu.CompilerParams(
            dimension_semantics=("parallel",)),
    )(x_wide, w1p, s1, b1, w2p, s2, b2, mask)

    # Crop the H/W halo back off; result is NCDHW with no transposes anywhere.
    out = out_wide.reshape(N, Cout, D, H + 2, W + 2)[:, :, :, 1:H + 1, 1:W + 1]
    return out


def _reference(x_ncdhw, w1, gamma1, beta1, w2, gamma2, beta2):
    """Pure-JAX reference (same semantics)."""
    eps = 1e-5
    x = jnp.transpose(x_ncdhw, (0, 2, 3, 4, 1)).astype(jnp.float32)  # NDHWC

    def conv3d(v, w):
        return lax.conv_general_dilated(
            v, w, window_strides=(1, 1, 1), padding="SAME",
            dimension_numbers=("NDHWC", "DHWIO", "NDHWC"))

    s1 = gamma1 / jnp.sqrt(1.0 + eps)
    s2 = gamma2 / jnp.sqrt(1.0 + eps)
    y1 = jnp.maximum(conv3d(x, w1) * s1 + beta1, 0.0)
    y2 = conv3d(y1, w2) * s2 + beta2
    out = jnp.maximum(y2 + x, 0.0)
    return jnp.transpose(out, (0, 4, 1, 2, 3))


if __name__ == "__main__":
    N, C, D, H, W = 2, 8, 4, 8, 8          # inplanes == planes == 8, stride=1
    inplanes = planes = C
    # midplanes is computed but unused by Conv3DSimple, as in torchvision.
    midplanes = inplanes * planes * 27 // (inplanes * 9 + 3 * planes)

    key = jax.random.PRNGKey(0)
    kx, kw1, kw2, kg1, kb1, kg2, kb2 = jax.random.split(key, 7)

    x = jax.random.normal(kx, (N, C, D, H, W), dtype=jnp.float32)
    w1 = jax.random.normal(kw1, (3, 3, 3, inplanes, planes), jnp.float32) * 0.1
    w2 = jax.random.normal(kw2, (3, 3, 3, planes, planes), jnp.float32) * 0.1
    gamma1 = 1.0 + 0.1 * jax.random.normal(kg1, (planes,), jnp.float32)
    beta1 = 0.1 * jax.random.normal(kb1, (planes,), jnp.float32)
    gamma2 = 1.0 + 0.1 * jax.random.normal(kg2, (planes,), jnp.float32)
    beta2 = 0.1 * jax.random.normal(kb2, (planes,), jnp.float32)

    out = basic_block(x, w1, gamma1, beta1, w2, gamma2, beta2)
    out = jax.block_until_ready(out)

    ref = _reference(x, w1, gamma1, beta1, w2, gamma2, beta2)
    assert out.shape == (N, C, D, H, W)
    assert jnp.allclose(out, ref, atol=2e-3, rtol=2e-3), "mismatch vs reference"

    print("KERNEL_OK")
</pallas_src>

<mosaic_0001>
module attributes {stable_mosaic.version = 11 : i64} {
  func.func @basic_block_kernel(%arg0: i32, %arg1: memref<1x8x400xf32, #tpu.memory_space<vmem>>, %arg2: memref<9x8x24xf32, #tpu.memory_space<vmem>>, %arg3: memref<8x1xf32, #tpu.memory_space<vmem>>, %arg4: memref<8x1xf32, #tpu.memory_space<vmem>>, %arg5: memref<9x8x24xf32, #tpu.memory_space<vmem>>, %arg6: memref<8x1xf32, #tpu.memory_space<vmem>>, %arg7: memref<8x1xf32, #tpu.memory_space<vmem>>, %arg8: memref<1x400xf32, #tpu.memory_space<vmem>>, %arg9: memref<1x8x400xf32, #tpu.memory_space<vmem>>, %arg10: memref<8x656xf32, #tpu.memory_space<vmem>>) attributes {dimension_semantics = [#tpu.dimension_semantics<parallel>], iteration_bounds = array<i64: 2>, scalar_prefetch = 0 : i64, scratch_operands = 1 : i64, tpu.core_type = #tpu.core_type<tc>, window_params = [{transform_indices = @transform_0, window_bounds = array<i64: 1, 8, 400>}, {pipeline_mode = #tpu.pipeline_mode<synchronous>, transform_indices = @transform_1, window_bounds = array<i64: 9, 8, 24>}, {pipeline_mode = #tpu.pipeline_mode<synchronous>, transform_indices = @transform_2, window_bounds = array<i64: 8, 1>}, {pipeline_mode = #tpu.pipeline_mode<synchronous>, transform_indices = @transform_3, window_bounds = array<i64: 8, 1>}, {pipeline_mode = #tpu.pipeline_mode<synchronous>, transform_indices = @transform_4, window_bounds = array<i64: 9, 8, 24>}, {pipeline_mode = #tpu.pipeline_mode<synchronous>, transform_indices = @transform_5, window_bounds = array<i64: 8, 1>}, {pipeline_mode = #tpu.pipeline_mode<synchronous>, transform_indices = @transform_6, window_bounds = array<i64: 8, 1>}, {pipeline_mode = #tpu.pipeline_mode<synchronous>, transform_indices = @transform_7, window_bounds = array<i64: 1, 400>}, {transform_indices = @transform_8, window_bounds = array<i64: 1, 8, 400>}]} {
    %c0 = arith.constant 0 : index
    %c0_0 = arith.constant 0 : index
    %0 = vector.load %arg3[%c0, %c0_0] : memref<8x1xf32, #tpu.memory_space<vmem>>, vector<8x1xf32>
    %c0_1 = arith.constant 0 : index
    %c0_2 = arith.constant 0 : index
    %1 = vector.load %arg4[%c0_1, %c0_2] : memref<8x1xf32, #tpu.memory_space<vmem>>, vector<8x1xf32>
    %c0_3 = arith.constant 0 : index
    %c0_4 = arith.constant 0 : index
    %2 = vector.load %arg6[%c0_3, %c0_4] : memref<8x1xf32, #tpu.memory_space<vmem>>, vector<8x1xf32>
    %c0_5 = arith.constant 0 : index
    %c0_6 = arith.constant 0 : index
    %3 = vector.load %arg7[%c0_5, %c0_6] : memref<8x1xf32, #tpu.memory_space<vmem>>, vector<8x1xf32>
    %c0_7 = arith.constant 0 : index
    %c0_8 = arith.constant 0 : index
    %4 = vector.load %arg8[%c0_7, %c0_8] : memref<1x400xf32, #tpu.memory_space<vmem>>, vector<1x400xf32>
    %cst = arith.constant 0.000000e+00 : f32
    %5 = vector.broadcast %cst : f32 to vector<8x128xf32>
    %c0_9 = arith.constant 0 : index
    %c0_10 = arith.constant 0 : index
    %6 = vector.load %arg10[%c0_9, %c0_10] : memref<8x656xf32, #tpu.memory_space<vmem>>, vector<8x128xf32>
    tpu.vector_store %arg10[%c0_9, %c0_10], %5 {strides = array<i32>} : memref<8x656xf32, #tpu.memory_space<vmem>>, vector<8x128xf32>,
    %cst_11 = arith.constant 0.000000e+00 : f32
    %7 = vector.broadcast %cst_11 : f32 to vector<8x128xf32>
    %c0_12 = arith.constant 0 : index
    %c528 = arith.constant 528 : index
    %8 = vector.load %arg10[%c0_12, %c528] : memref<8x656xf32, #tpu.memory_space<vmem>>, vector<8x128xf32>
    tpu.vector_store %arg10[%c0_12, %c528], %7 {strides = array<i32>} : memref<8x656xf32, #tpu.memory_space<vmem>>, vector<8x128xf32>,
    %c0_13 = arith.constant 0 : index
    %c0_14 = arith.constant 0 : index
    %c0_15 = arith.constant 0 : index
    %9 = vector.load %arg1[%c0_13, %c0_14, %c0_15] : memref<1x8x400xf32, #tpu.memory_space<vmem>>, vector<1x8x400xf32>
    %10 = vector.shape_cast %9 : vector<1x8x400xf32> to vector<8x400xf32>
    %c0_16 = arith.constant 0 : index
    %c128 = arith.constant 128 : index
    %11 = vector.load %arg10[%c0_16, %c128] : memref<8x656xf32, #tpu.memory_space<vmem>>, vector<8x400xf32>
    tpu.vector_store %arg10[%c0_16, %c128], %10 {strides = array<i32>} : memref<8x656xf32, #tpu.memory_space<vmem>>, vector<8x400xf32>,
    %cst_17 = arith.constant 0.000000e+00 : f32
    %12 = vector.broadcast %cst_17 : f32 to vector<8x400xf32>
    %c0_18 = arith.constant 0 : index
    %c17 = arith.constant 17 : index
    %13 = vector.load %arg10[%c0_18, %c17] : memref<8x656xf32, #tpu.memory_space<vmem>>, vector<8x400xf32>
    %c0_19 = arith.constant 0 : index
    %c18 = arith.constant 18 : index
    %14 = vector.load %arg10[%c0_19, %c18] : memref<8x656xf32, #tpu.memory_space<vmem>>, vector<8x400xf32>
    %c0_20 = arith.constant 0 : index
    %c19 = arith.constant 19 : index
    %15 = vector.load %arg10[%c0_20, %c19] : memref<8x656xf32, #tpu.memory_space<vmem>>, vector<8x400xf32>
    %16 = tpu.concatenate %13, %14, %15 in 0 : vector<8x400xf32>, vector<8x400xf32>, vector<8x400xf32> -> vector<24x400xf32>
    %c0_21 = arith.constant 0 : index
    %c0_22 = arith.constant 0 : index
    %c0_23 = arith.constant 0 : index
    %17 = vector.load %arg2[%c0_21, %c0_22, %c0_23] : memref<9x8x24xf32, #tpu.memory_space<vmem>>, vector<1x8x24xf32>
    %18 = vector.shape_cast %17 : vector<1x8x24xf32> to vector<8x24xf32>
    %cst_24 = arith.constant dense<0.000000e+00> : vector<8x400xf32>
    %19 = tpu.matmul %18, %16, %cst_24 {dimension_numbers = #tpu.dot_dimension_numbers<[1], [0], [0], [1], [0, 0, 1, 1], [], []>} : vector<8x24xf32>, vector<24x400xf32>, vector<8x400xf32> -> vector<8x400xf32>
    %20 = arith.addf %12, %19 : vector<8x400xf32>
    %c0_25 = arith.constant 0 : index
    %c27 = arith.constant 27 : index
    %21 = vector.load %arg10[%c0_25, %c27] : memref<8x656xf32, #tpu.memory_space<vmem>>, vector<8x400xf32>
    %c0_26 = arith.constant 0 : index
    %c28 = arith.constant 28 : index
    %22 = vector.load %arg10[%c0_26, %c28] : memref<8x656xf32, #tpu.memory_space<vmem>>, vector<8x400xf32>
    %c0_27 = arith.constant 0 : index
    %c29 = arith.constant 29 : index
    %23 = vector.load %arg10[%c0_27, %c29] : memref<8x656xf32, #tpu.memory_space<vmem>>, vector<8x400xf32>
    %24 = tpu.concatenate %21, %22, %23 in 0 : vector<8x400xf32>, vector<8x400xf32>, vector<8x400xf32> -> vector<24x400xf32>
    %c1 = arith.constant 1 : index
    %c0_28 = arith.constant 0 : index
    %c0_29 = arith.constant 0 : index
    %25 = vector.load %arg2[%c1, %c0_28, %c0_29] : memref<9x8x24xf32, #tpu.memory_space<vmem>>, vector<1x8x24xf32>
    %26 = vector.shape_cast %25 : vector<1x8x24xf32> to vector<8x24xf32>
    %cst_30 = arith.constant dense<0.000000e+00> : vector<8x400xf32>
    %27 = tpu.matmul %26, %24, %cst_30 {dimension_numbers = #tpu.dot_dimension_numbers<[1], [0], [0], [1], [0, 0, 1, 1], [], []>} : vector<8x24xf32>, vector<24x400xf32>, vector<8x400xf32> -> vector<8x400xf32>
    %28 = arith.addf %20, %27 : vector<8x400xf32>
    %c0_31 = arith.constant 0 : index
    %c37 = arith.constant 37 : index
    %29 = vector.load %arg10[%c0_31, %c37] : memref<8x656xf32, #tpu.memory_space<vmem>>, vector<8x400xf32>
    %c0_32 = arith.constant 0 : index
    %c38 = arith.constant 38 : index
    %30 = vector.load %arg10[%c0_32, %c38] : memref<8x656xf32, #tpu.memory_space<vmem>>, vector<8x400xf32>
    %c0_33 = arith.constant 0 : index
    %c39 = arith.constant 39 : index
    %31 = vector.load %arg10[%c0_33, %c39] : memref<8x656xf32, #tpu.memory_space<vmem>>, vector<8x400xf32>
    %32 = tpu.concatenate %29, %30, %31 in 0 : vector<8x400xf32>, vector<8x400xf32>, vector<8x400xf32> -> vector<24x400xf32>
    %c2 = arith.constant 2 : index
    %c0_34 = arith.constant 0 : index
    %c0_35 = arith.constant 0 : index
    %33 = vector.load %arg2[%c2, %c0_34, %c0_35] : memref<9x8x24xf32, #tpu.memory_space<vmem>>, vector<1x8x24xf32>
    %34 = vector.shape_cast %33 : vector<1x8x24xf32> to vector<8x24xf32>
    %cst_36 = arith.constant dense<0.000000e+00> : vector<8x400xf32>
    %35 = tpu.matmul %34, %32, %cst_36 {dimension_numbers = #tpu.dot_dimension_numbers<[1], [0], [0], [1], [0, 0, 1, 1], [], []>} : vector<8x24xf32>, vector<24x400xf32>, vector<8x400xf32> -> vector<8x400xf32>
    %36 = arith.addf %28, %35 : vector<8x400xf32>
    %c0_37 = arith.constant 0 : index
    %c117 = arith.constant 117 : index
    %37 = vector.load %arg10[%c0_37, %c117] : memref<8x656xf32, #tpu.memory_space<vmem>>, vector<8x400xf32>
    %c0_38 = arith.constant 0 : index
    %c118 = arith.constant 118 : index
    %38 = vector.load %arg10[%c0_38, %c118] : memref<8x656xf32, #tpu.memory_space<vmem>>, vector<8x400xf32>
    %c0_39 = arith.constant 0 : index
    %c119 = arith.constant 119 : index
    %39 = vector.load %arg10[%c0_39, %c119] : memref<8x656xf32, #tpu.memory_space<vmem>>, vector<8x400xf32>
    %40 = tpu.concatenate %37, %38, %39 in 0 : vector<8x400xf32>, vector<8x400xf32>, vector<8x400xf32> -> vector<24x400xf32>
    %c3 = arith.constant 3 : index
    %c0_40 = arith.constant 0 : index
    %c0_41 = arith.constant 0 : index
    %41 = vector.load %arg2[%c3, %c0_40, %c0_41] : memref<9x8x24xf32, #tpu.memory_space<vmem>>, vector<1x8x24xf32>
    %42 = vector.shape_cast %41 : vector<1x8x24xf32> to vector<8x24xf32>
    %cst_42 = arith.constant dense<0.000000e+00> : vector<8x400xf32>
    %43 = tpu.matmul %42, %40, %cst_42 {dimension_numbers = #tpu.dot_dimension_numbers<[1], [0], [0], [1], [0, 0, 1, 1], [], []>} : vector<8x24xf32>, vector<24x400xf32>, vector<8x400xf32> -> vector<8x400xf32>
    %44 = arith.addf %36, %43 : vector<8x400xf32>
    %c0_43 = arith.constant 0 : index
    %c127 = arith.constant 127 : index
    %45 = vector.load %arg10[%c0_43, %c127] : memref<8x656xf32, #tpu.memory_space<vmem>>, vector<8x400xf32>
    %c0_44 = arith.constant 0 : index
    %c128_45 = arith.constant 128 : index
    %46 = vector.load %arg10[%c0_44, %c128_45] : memref<8x656xf32, #tpu.memory_space<vmem>>, vector<8x400xf32>
    %c0_46 = arith.constant 0 : index
    %c129 = arith.constant 129 : index
    %47 = vector.load %arg10[%c0_46, %c129] : memref<8x656xf32, #tpu.memory_space<vmem>>, vector<8x400xf32>
    %48 = tpu.concatenate %45, %46, %47 in 0 : vector<8x400xf32>, vector<8x400xf32>, vector<8x400xf32> -> vector<24x400xf32>
    %c4 = arith.constant 4 : index
    %c0_47 = arith.constant 0 : index
    %c0_48 = arith.constant 0 : index
    %49 = vector.load %arg2[%c4, %c0_47, %c0_48] : memref<9x8x24xf32, #tpu.memory_space<vmem>>, vector<1x8x24xf32>
    %50 = vector.shape_cast %49 : vector<1x8x24xf32> to vector<8x24xf32>
    %cst_49 = arith.constant dense<0.000000e+00> : vector<8x400xf32>
    %51 = tpu.matmul %50, %48, %cst_49 {dimension_numbers = #tpu.dot_dimension_numbers<[1], [0], [0], [1], [0, 0, 1, 1], [], []>} : vector<8x24xf32>, vector<24x400xf32>, vector<8x400xf32> -> vector<8x400xf32>
    %52 = arith.addf %44, %51 : vector<8x400xf32>
    %c0_50 = arith.constant 0 : index
    %c137 = arith.constant 137 : index
    %53 = vector.load %arg10[%c0_50, %c137] : memref<8x656xf32, #tpu.memory_space<vmem>>, vector<8x400xf32>
    %c0_51 = arith.constant 0 : index
    %c138 = arith.constant 138 : index
    %54 = vector.load %arg10[%c0_51, %c138] : memref<8x656xf32, #tpu.memory_space<vmem>>, vector<8x400xf32>
    %c0_52 = arith.constant 0 : index
    %c139 = arith.constant 139 : index
    %55 = vector.load %arg10[%c0_52, %c139] : memref<8x656xf32, #tpu.memory_space<vmem>>, vector<8x400xf32>
    %56 = tpu.concatenate %53, %54, %55 in 0 : vector<8x400xf32>, vector<8x400xf32>, vector<8x400xf32> -> vector<24x400xf32>
    %c5 = arith.constant 5 : index
    %c0_53 = arith.constant 0 : index
    %c0_54 = arith.constant 0 : index
    %57 = vector.load %arg2[%c5, %c0_53, %c0_54] : memref<9x8x24xf32, #tpu.memory_space<vmem>>, vector<1x8x24xf32>
    %58 = vector.shape_cast %57 : vector<1x8x24xf32> to vector<8x24xf32>
    %cst_55 = arith.constant dense<0.000000e+00> : vector<8x400xf32>
    %59 = tpu.matmul %58, %56, %cst_55 {dimension_numbers = #tpu.dot_dimension_numbers<[1], [0], [0], [1], [0, 0, 1, 1], [], []>} : vector<8x24xf32>, vector<24x400xf32>, vector<8x400xf32> -> vector<8x400xf32>
    %60 = arith.addf %52, %59 : vector<8x400xf32>
    %c0_56 = arith.constant 0 : index
    %c217 = arith.constant 217 : index
    %61 = vector.load %arg10[%c0_56, %c217] : memref<8x656xf32, #tpu.memory_space<vmem>>, vector<8x400xf32>
    %c0_57 = arith.constant 0 : index
    %c218 = arith.constant 218 : index
    %62 = vector.load %arg10[%c0_57, %c218] : memref<8x656xf32, #tpu.memory_space<vmem>>, vector<8x400xf32>
    %c0_58 = arith.constant 0 : index
    %c219 = arith.constant 219 : index
    %63 = vector.load %arg10[%c0_58, %c219] : memref<8x656xf32, #tpu.memory_space<vmem>>, vector<8x400xf32>
    %64 = tpu.concatenate %61, %62, %63 in 0 : vector<8x400xf32>, vector<8x400xf32>, vector<8x400xf32> -> vector<24x400xf32>
    %c6 = arith.constant 6 : index
    %c0_59 = arith.constant 0 : index
    %c0_60 = arith.constant 0 : index
    %65 = vector.load %arg2[%c6, %c0_59, %c0_60] : memref<9x8x24xf32, #tpu.memory_space<vmem>>, vector<1x8x24xf32>
    %66 = vector.shape_cast %65 : vector<1x8x24xf32> to vector<8x24xf32>
    %cst_61 = arith.constant dense<0.000000e+00> : vector<8x400xf32>
    %67 = tpu.matmul %66, %64, %cst_61 {dimension_numbers = #tpu.dot_dimension_numbers<[1], [0], [0], [1], [0, 0, 1, 1], [], []>} : vector<8x24xf32>, vector<24x400xf32>, vector<8x400xf32> -> vector<8x400xf32>
    %68 = arith.addf %60, %67 : vector<8x400xf32>
    %c0_62 = arith.constant 0 : index
    %c227 = arith.constant 227 : index
    %69 = vector.load %arg10[%c0_62, %c227] : memref<8x656xf32, #tpu.memory_space<vmem>>, vector<8x400xf32>
    %c0_63 = arith.constant 0 : index
    %c228 = arith.constant 228 : index
    %70 = vector.load %arg10[%c0_63, %c228] : memref<8x656xf32, #tpu.memory_space<vmem>>, vector<8x400xf32>
    %c0_64 = arith.constant 0 : index
    %c229 = arith.constant 229 : index
    %71 = vector.load %arg10[%c0_64, %c229] : memref<8x656xf32, #tpu.memory_space<vmem>>, vector<8x400xf32>
    %72 = tpu.concatenate %69, %70, %71 in 0 : vector<8x400xf32>, vector<8x400xf32>, vector<8x400xf32> -> vector<24x400xf32>
    %c7 = arith.constant 7 : index
    %c0_65 = arith.constant 0 : index
    %c0_66 = arith.constant 0 : index
    %73 = vector.load %arg2[%c7, %c0_65, %c0_66] : memref<9x8x24xf32, #tpu.memory_space<vmem>>, vector<1x8x24xf32>
    %74 = vector.shape_cast %73 : vector<1x8x24xf32> to vector<8x24xf32>
    %cst_67 = arith.constant dense<0.000000e+00> : vector<8x400xf32>
    %75 = tpu.matmul %74, %72, %cst_67 {dimension_numbers = #tpu.dot_dimension_numbers<[1], [0], [0], [1], [0, 0, 1, 1], [], []>} : vector<8x24xf32>, vector<24x400xf32>, vector<8x400xf32> -> vector<8x400xf32>
    %76 = arith.addf %68, %75 : vector<8x400xf32>
    %c0_68 = arith.constant 0 : index
    %c237 = arith.constant 237 : index
    %77 = vector.load %arg10[%c0_68, %c237] : memref<8x656xf32, #tpu.memory_space<vmem>>, vector<8x400xf32>
    %c0_69 = arith.constant 0 : index
    %c238 = arith.constant 238 : index
    %78 = vector.load %arg10[%c0_69, %c238] : memref<8x656xf32, #tpu.memory_space<vmem>>, vector<8x400xf32>
    %c0_70 = arith.constant 0 : index
    %c239 = arith.constant 239 : index
    %79 = vector.load %arg10[%c0_70, %c239] : memref<8x656xf32, #tpu.memory_space<vmem>>, vector<8x400xf32>
    %80 = tpu.concatenate %77, %78, %79 in 0 : vector<8x400xf32>, vector<8x400xf32>, vector<8x400xf32> -> vector<24x400xf32>
    %c8 = arith.constant 8 : index
    %c0_71 = arith.constant 0 : index
    %c0_72 = arith.constant 0 : index
    %81 = vector.load %arg2[%c8, %c0_71, %c0_72] : memref<9x8x24xf32, #tpu.memory_space<vmem>>, vector<1x8x24xf32>
    %82 = vector.shape_cast %81 : vector<1x8x24xf32> to vector<8x24xf32>
    %cst_73 = arith.constant dense<0.000000e+00> : vector<8x400xf32>
    %83 = tpu.matmul %82, %80, %cst_73 {dimension_numbers = #tpu.dot_dimension_numbers<[1], [0], [0], [1], [0, 0, 1, 1], [], []>} : vector<8x24xf32>, vector<24x400xf32>, vector<8x400xf32> -> vector<8x400xf32>
    %84 = arith.addf %76, %83 : vector<8x400xf32>
    %85 = vector.broadcast %0 : vector<8x1xf32> to vector<8x400xf32>
    %86 = arith.mulf %84, %85 : vector<8x400xf32>
    %87 = vector.broadcast %1 : vector<8x1xf32> to vector<8x400xf32>
    %88 = arith.addf %86, %87 : vector<8x400xf32>
    %cst_74 = arith.constant 0.000000e+00 : f32
    %89 = vector.broadcast %cst_74 : f32 to vector<8x400xf32>
    %90 = arith.maximumf %88, %89 : vector<8x400xf32>
    %91 = vector.broadcast %4 : vector<1x400xf32> to vector<8x400xf32>
    %92 = arith.mulf %90, %91 : vector<8x400xf32>
    %c0_75 = arith.constant 0 : index
    %c128_76 = arith.constant 128 : index
    %93 = vector.load %arg10[%c0_75, %c128_76] : memref<8x656xf32, #tpu.memory_space<vmem>>, vector<8x400xf32>
    tpu.vector_store %arg10[%c0_75, %c128_76], %92 {strides = array<i32>} : memref<8x656xf32, #tpu.memory_space<vmem>>, vector<8x400xf32>,
    %cst_77 = arith.constant 0.000000e+00 : f32
    %94 = vector.broadcast %cst_77 : f32 to vector<8x400xf32>
    %c0_78 = arith.constant 0 : index
    %c17_79 = arith.constant 17 : index
    %95 = vector.load %arg10[%c0_78, %c17_79] : memref<8x656xf32, #tpu.memory_space<vmem>>, vector<8x400xf32>
    %c0_80 = arith.constant 0 : index
    %c18_81 = arith.constant 18 : index
    %96 = vector.load %arg10[%c0_80, %c18_81] : memref<8x656xf32, #tpu.memory_space<vmem>>, vector<8x400xf32>
    %c0_82 = arith.constant 0 : index
    %c19_83 = arith.constant 19 : index
    %97 = vector.load %arg10[%c0_82, %c19_83] : memref<8x656xf32, #tpu.memory_space<vmem>>, vector<8x400xf32>
    %98 = tpu.concatenate %95, %96, %97 in 0 : vector<8x400xf32>, vector<8x400xf32>, vector<8x400xf32> -> vector<24x400xf32>
    %c0_84 = arith.constant 0 : index
    %c0_85 = arith.constant 0 : index
    %c0_86 = arith.constant 0 : index
    %99 = vector.load %arg5[%c0_84, %c0_85, %c0_86] : memref<9x8x24xf32, #tpu.memory_space<vmem>>, vector<1x8x24xf32>
    %100 = vector.shape_cast %99 : vector<1x8x24xf32> to vector<8x24xf32>
    %cst_87 = arith.constant dense<0.000000e+00> : vector<8x400xf32>
    %101 = tpu.matmul %100, %98, %cst_87 {dimension_numbers = #tpu.dot_dimension_numbers<[1], [0], [0], [1], [0, 0, 1, 1], [], []>} : vector<8x24xf32>, vector<24x400xf32>, vector<8x400xf32> -> vector<8x400xf32>
    %102 = arith.addf %94, %101 : vector<8x400xf32>
    %c0_88 = arith.constant 0 : index
    %c27_89 = arith.constant 27 : index
    %103 = vector.load %arg10[%c0_88, %c27_89] : memref<8x656xf32, #tpu.memory_space<vmem>>, vector<8x400xf32>
    %c0_90 = arith.constant 0 : index
    %c28_91 = arith.constant 28 : index
    %104 = vector.load %arg10[%c0_90, %c28_91] : memref<8x656xf32, #tpu.memory_space<vmem>>, vector<8x400xf32>
    %c0_92 = arith.constant 0 : index
    %c29_93 = arith.constant 29 : index
    %105 = vector.load %arg10[%c0_92, %c29_93] : memref<8x656xf32, #tpu.memory_space<vmem>>, vector<8x400xf32>
    %106 = tpu.concatenate %103, %104, %105 in 0 : vector<8x400xf32>, vector<8x400xf32>, vector<8x400xf32> -> vector<24x400xf32>
    %c1_94 = arith.constant 1 : index
    %c0_95 = arith.constant 0 : index
    %c0_96 = arith.constant 0 : index
    %107 = vector.load %arg5[%c1_94, %c0_95, %c0_96] : memref<9x8x24xf32, #tpu.memory_space<vmem>>, vector<1x8x24xf32>
    %108 = vector.shape_cast %107 : vector<1x8x24xf32> to vector<8x24xf32>
    %cst_97 = arith.constant dense<0.000000e+00> : vector<8x400xf32>
    %109 = tpu.matmul %108, %106, %cst_97 {dimension_numbers = #tpu.dot_dimension_numbers<[1], [0], [0], [1], [0, 0, 1, 1], [], []>} : vector<8x24xf32>, vector<24x400xf32>, vector<8x400xf32> -> vector<8x400xf32>
    %110 = arith.addf %102, %109 : vector<8x400xf32>
    %c0_98 = arith.constant 0 : index
    %c37_99 = arith.constant 37 : index
    %111 = vector.load %arg10[%c0_98, %c37_99] : memref<8x656xf32, #tpu.memory_space<vmem>>, vector<8x400xf32>
    %c0_100 = arith.constant 0 : index
    %c38_101 = arith.constant 38 : index
    %112 = vector.load %arg10[%c0_100, %c38_101] : memref<8x656xf32, #tpu.memory_space<vmem>>, vector<8x400xf32>
    %c0_102 = arith.constant 0 : index
    %c39_103 = arith.constant 39 : index
    %113 = vector.load %arg10[%c0_102, %c39_103] : memref<8x656xf32, #tpu.memory_space<vmem>>, vector<8x400xf32>
    %114 = tpu.concatenate %111, %112, %113 in 0 : vector<8x400xf32>, vector<8x400xf32>, vector<8x400xf32> -> vector<24x400xf32>
    %c2_104 = arith.constant 2 : index
    %c0_105 = arith.constant 0 : index
    %c0_106 = arith.constant 0 : index
    %115 = vector.load %arg5[%c2_104, %c0_105, %c0_106] : memref<9x8x24xf32, #tpu.memory_space<vmem>>, vector<1x8x24xf32>
    %116 = vector.shape_cast %115 : vector<1x8x24xf32> to vector<8x24xf32>
    %cst_107 = arith.constant dense<0.000000e+00> : vector<8x400xf32>
    %117 = tpu.matmul %116, %114, %cst_107 {dimension_numbers = #tpu.dot_dimension_numbers<[1], [0], [0], [1], [0, 0, 1, 1], [], []>} : vector<8x24xf32>, vector<24x400xf32>, vector<8x400xf32> -> vector<8x400xf32>
    %118 = arith.addf %110, %117 : vector<8x400xf32>
    %c0_108 = arith.constant 0 : index
    %c117_109 = arith.constant 117 : index
    %119 = vector.load %arg10[%c0_108, %c117_109] : memref<8x656xf32, #tpu.memory_space<vmem>>, vector<8x400xf32>
    %c0_110 = arith.constant 0 : index
    %c118_111 = arith.constant 118 : index
    %120 = vector.load %arg10[%c0_110, %c118_111] : memref<8x656xf32, #tpu.memory_space<vmem>>, vector<8x400xf32>
    %c0_112 = arith.constant 0 : index
    %c119_113 = arith.constant 119 : index
    %121 = vector.load %arg10[%c0_112, %c119_113] : memref<8x656xf32, #tpu.memory_space<vmem>>, vector<8x400xf32>
    %122 = tpu.concatenate %119, %120, %121 in 0 : vector<8x400xf32>, vector<8x400xf32>, vector<8x400xf32> -> vector<24x400xf32>
    %c3_114 = arith.constant 3 : index
    %c0_115 = arith.constant 0 : index
    %c0_116 = arith.constant 0 : index
    %123 = vector.load %arg5[%c3_114, %c0_115, %c0_116] : memref<9x8x24xf32, #tpu.memory_space<vmem>>, vector<1x8x24xf32>
    %124 = vector.shape_cast %123 : vector<1x8x24xf32> to vector<8x24xf32>
    %cst_117 = arith.constant dense<0.000000e+00> : vector<8x400xf32>
    %125 = tpu.matmul %124, %122, %cst_117 {dimension_numbers = #tpu.dot_dimension_numbers<[1], [0], [0], [1], [0, 0, 1, 1], [], []>} : vector<8x24xf32>, vector<24x400xf32>, vector<8x400xf32> -> vector<8x400xf32>
    %126 = arith.addf %118, %125 : vector<8x400xf32>
    %c0_118 = arith.constant 0 : index
    %c127_119 = arith.constant 127 : index
    %127 = vector.load %arg10[%c0_118, %c127_119] : memref<8x656xf32, #tpu.memory_space<vmem>>, vector<8x400xf32>
    %c0_120 = arith.constant 0 : index
    %c128_121 = arith.constant 128 : index
    %128 = vector.load %arg10[%c0_120, %c128_121] : memref<8x656xf32, #tpu.memory_space<vmem>>, vector<8x400xf32>
    %c0_122 = arith.constant 0 : index
    %c129_123 = arith.constant 129 : index
    %129 = vector.load %arg10[%c0_122, %c129_123] : memref<8x656xf32, #tpu.memory_space<vmem>>, vector<8x400xf32>
    %130 = tpu.concatenate %127, %128, %129 in 0 : vector<8x400xf32>, vector<8x400xf32>, vector<8x400xf32> -> vector<24x400xf32>
    %c4_124 = arith.constant 4 : index
    %c0_125 = arith.constant 0 : index
    %c0_126 = arith.constant 0 : index
    %131 = vector.load %arg5[%c4_124, %c0_125, %c0_126] : memref<9x8x24xf32, #tpu.memory_space<vmem>>, vector<1x8x24xf32>
    %132 = vector.shape_cast %131 : vector<1x8x24xf32> to vector<8x24xf32>
    %cst_127 = arith.constant dense<0.000000e+00> : vector<8x400xf32>
    %133 = tpu.matmul %132, %130, %cst_127 {dimension_numbers = #tpu.dot_dimension_numbers<[1], [0], [0], [1], [0, 0, 1, 1], [], []>} : vector<8x24xf32>, vector<24x400xf32>, vector<8x400xf32> -> vector<8x400xf32>
    %134 = arith.addf %126, %133 : vector<8x400xf32>
    %c0_128 = arith.constant 0 : index
    %c137_129 = arith.constant 137 : index
    %135 = vector.load %arg10[%c0_128, %c137_129] : memref<8x656xf32, #tpu.memory_space<vmem>>, vector<8x400xf32>
    %c0_130 = arith.constant 0 : index
    %c138_131 = arith.constant 138 : index
    %136 = vector.load %arg10[%c0_130, %c138_131] : memref<8x656xf32, #tpu.memory_space<vmem>>, vector<8x400xf32>
    %c0_132 = arith.constant 0 : index
    %c139_133 = arith.constant 139 : index
    %137 = vector.load %arg10[%c0_132, %c139_133] : memref<8x656xf32, #tpu.memory_space<vmem>>, vector<8x400xf32>
    %138 = tpu.concatenate %135, %136, %137 in 0 : vector<8x400xf32>, vector<8x400xf32>, vector<8x400xf32> -> vector<24x400xf32>
    %c5_134 = arith.constant 5 : index
    %c0_135 = arith.constant 0 : index
    %c0_136 = arith.constant 0 : index
    %139 = vector.load %arg5[%c5_134, %c0_135, %c0_136] : memref<9x8x24xf32, #tpu.memory_space<vmem>>, vector<1x8x24xf32>
    %140 = vector.shape_cast %139 : vector<1x8x24xf32> to vector<8x24xf32>
    %cst_137 = arith.constant dense<0.000000e+00> : vector<8x400xf32>
    %141 = tpu.matmul %140, %138, %cst_137 {dimension_numbers = #tpu.dot_dimension_numbers<[1], [0], [0], [1], [0, 0, 1, 1], [], []>} : vector<8x24xf32>, vector<24x400xf32>, vector<8x400xf32> -> vector<8x400xf32>
    %142 = arith.addf %134, %141 : vector<8x400xf32>
    %c0_138 = arith.constant 0 : index
    %c217_139 = arith.constant 217 : index
    %143 = vector.load %arg10[%c0_138, %c217_139] : memref<8x656xf32, #tpu.memory_space<vmem>>, vector<8x400xf32>
    %c0_140 = arith.constant 0 : index
    %c218_141 = arith.constant 218 : index
    %144 = vector.load %arg10[%c0_140, %c218_141] : memref<8x656xf32, #tpu.memory_space<vmem>>, vector<8x400xf32>
    %c0_142 = arith.constant 0 : index
    %c219_143 = arith.constant 219 : index
    %145 = vector.load %arg10[%c0_142, %c219_143] : memref<8x656xf32, #tpu.memory_space<vmem>>, vector<8x400xf32>
    %146 = tpu.concatenate %143, %144, %145 in 0 : vector<8x400xf32>, vector<8x400xf32>, vector<8x400xf32> -> vector<24x400xf32>
    %c6_144 = arith.constant 6 : index
    %c0_145 = arith.constant 0 : index
    %c0_146 = arith.constant 0 : index
    %147 = vector.load %arg5[%c6_144, %c0_145, %c0_146] : memref<9x8x24xf32, #tpu.memory_space<vmem>>, vector<1x8x24xf32>
    %148 = vector.shape_cast %147 : vector<1x8x24xf32> to vector<8x24xf32>
    %cst_147 = arith.constant dense<0.000000e+00> : vector<8x400xf32>
    %149 = tpu.matmul %148, %146, %cst_147 {dimension_numbers = #tpu.dot_dimension_numbers<[1], [0], [0], [1], [0, 0, 1, 1], [], []>} : vector<8x24xf32>, vector<24x400xf32>, vector<8x400xf32> -> vector<8x400xf32>
    %150 = arith.addf %142, %149 : vector<8x400xf32>
    %c0_148 = arith.constant 0 : index
    %c227_149 = arith.constant 227 : index
    %151 = vector.load %arg10[%c0_148, %c227_149] : memref<8x656xf32, #tpu.memory_space<vmem>>, vector<8x400xf32>
    %c0_150 = arith.constant 0 : index
    %c228_151 = arith.constant 228 : index
    %152 = vector.load %arg10[%c0_150, %c228_151] : memref<8x656xf32, #tpu.memory_space<vmem>>, vector<8x400xf32>
    %c0_152 = arith.constant 0 : index
    %c229_153 = arith.constant 229 : index
    %153 = vector.load %arg10[%c0_152, %c229_153] : memref<8x656xf32, #tpu.memory_space<vmem>>, vector<8x400xf32>
    %154 = tpu.concatenate %151, %152, %153 in 0 : vector<8x400xf32>, vector<8x400xf32>, vector<8x400xf32> -> vector<24x400xf32>
    %c7_154 = arith.constant 7 : index
    %c0_155 = arith.constant 0 : index
    %c0_156 = arith.constant 0 : index
    %155 = vector.load %arg5[%c7_154, %c0_155, %c0_156] : memref<9x8x24xf32, #tpu.memory_space<vmem>>, vector<1x8x24xf32>
    %156 = vector.shape_cast %155 : vector<1x8x24xf32> to vector<8x24xf32>
    %cst_157 = arith.constant dense<0.000000e+00> : vector<8x400xf32>
    %157 = tpu.matmul %156, %154, %cst_157 {dimension_numbers = #tpu.dot_dimension_numbers<[1], [0], [0], [1], [0, 0, 1, 1], [], []>} : vector<8x24xf32>, vector<24x400xf32>, vector<8x400xf32> -> vector<8x400xf32>
    %158 = arith.addf %150, %157 : vector<8x400xf32>
    %c0_158 = arith.constant 0 : index
    %c237_159 = arith.constant 237 : index
    %159 = vector.load %arg10[%c0_158, %c237_159] : memref<8x656xf32, #tpu.memory_space<vmem>>, vector<8x400xf32>
    %c0_160 = arith.constant 0 : index
    %c238_161 = arith.constant 238 : index
    %160 = vector.load %arg10[%c0_160, %c238_161] : memref<8x656xf32, #tpu.memory_space<vmem>>, vector<8x400xf32>
    %c0_162 = arith.constant 0 : index
    %c239_163 = arith.constant 239 : index
    %161 = vector.load %arg10[%c0_162, %c239_163] : memref<8x656xf32, #tpu.memory_space<vmem>>, vector<8x400xf32>
    %162 = tpu.concatenate %159, %160, %161 in 0 : vector<8x400xf32>, vector<8x400xf32>, vector<8x400xf32> -> vector<24x400xf32>
    %c8_164 = arith.constant 8 : index
    %c0_165 = arith.constant 0 : index
    %c0_166 = arith.constant 0 : index
    %163 = vector.load %arg5[%c8_164, %c0_165, %c0_166] : memref<9x8x24xf32, #tpu.memory_space<vmem>>, vector<1x8x24xf32>
    %164 = vector.shape_cast %163 : vector<1x8x24xf32> to vector<8x24xf32>
    %cst_167 = arith.constant dense<0.000000e+00> : vector<8x400xf32>
    %165 = tpu.matmul %164, %162, %cst_167 {dimension_numbers = #tpu.dot_dimension_numbers<[1], [0], [0], [1], [0, 0, 1, 1], [], []>} : vector<8x24xf32>, vector<24x400xf32>, vector<8x400xf32> -> vector<8x400xf32>
    %166 = arith.addf %158, %165 : vector<8x400xf32>
    %167 = vector.broadcast %2 : vector<8x1xf32> to vector<8x400xf32>
    %168 = arith.mulf %166, %167 : vector<8x400xf32>
    %169 = vector.broadcast %3 : vector<8x1xf32> to vector<8x400xf32>
    %170 = arith.addf %168, %169 : vector<8x400xf32>
    %171 = arith.addf %170, %10 : vector<8x400xf32>
    %cst_168 = arith.constant 0.000000e+00 : f32
    %172 = vector.broadcast %cst_168 : f32 to vector<8x400xf32>
    %173 = arith.maximumf %171, %172 : vector<8x400xf32>
    %c0_169 = arith.constant 0 : index
    %c0_170 = arith.constant 0 : index
    %c0_171 = arith.constant 0 : index
    %174 = vector.load %arg9[%c0_169, %c0_170, %c0_171] : memref<1x8x400xf32, #tpu.memory_space<vmem>>, vector<1x8x400xf32>
    %175 = vector.shape_cast %174 : vector<1x8x400xf32> to vector<8x400xf32>
    %176 = vector.shape_cast %173 : vector<8x400xf32> to vector<1x8x400xf32>
    tpu.vector_store %arg9[%c0_169, %c0_170, %c0_171], %176 {strides = array<i32>} : memref<1x8x400xf32, #tpu.memory_space<vmem>>, vector<1x8x400xf32>,
    return
  }
  func.func @transform_0(%arg0: i32) -> (i32, i32, i32) {
    %c0_i32 = arith.constant 0 : i32
    %c0_i32_0 = arith.constant 0 : i32
    %c0_i32_1 = arith.constant 0 : i32
    return %arg0, %c0_i32, %c0_i32_0 : i32, i32, i32
  }
  func.func @transform_1(%arg0: i32) -> (i32, i32, i32) {
    %c0_i32 = arith.constant 0 : i32
    %c0_i32_0 = arith.constant 0 : i32
    %c0_i32_1 = arith.constant 0 : i32
    %c0_i32_2 = arith.constant 0 : i32
    return %c0_i32, %c0_i32_0, %c0_i32_1 : i32, i32, i32
  }
  func.func @transform_2(%arg0: i32) -> (i32, i32) {
    %c0_i32 = arith.constant 0 : i32
    %c0_i32_0 = arith.constant 0 : i32
    %c0_i32_1 = arith.constant 0 : i32
    return %c0_i32, %c0_i32_0 : i32, i32
  }
  func.func @transform_3(%arg0: i32) -> (i32, i32) {
    %c0_i32 = arith.constant 0 : i32
    %c0_i32_0 = arith.constant 0 : i32
    %c0_i32_1 = arith.constant 0 : i32
    return %c0_i32, %c0_i32_0 : i32, i32
  }
  func.func @transform_4(%arg0: i32) -> (i32, i32, i32) {
    %c0_i32 = arith.constant 0 : i32
    %c0_i32_0 = arith.constant 0 : i32
    %c0_i32_1 = arith.constant 0 : i32
    %c0_i32_2 = arith.constant 0 : i32
    return %c0_i32, %c0_i32_0, %c0_i32_1 : i32, i32, i32
  }
  func.func @transform_5(%arg0: i32) -> (i32, i32) {
    %c0_i32 = arith.constant 0 : i32
    %c0_i32_0 = arith.constant 0 : i32
    %c0_i32_1 = arith.constant 0 : i32
    return %c0_i32, %c0_i32_0 : i32, i32
  }
  func.func @transform_6(%arg0: i32) -> (i32, i32) {
    %c0_i32 = arith.constant 0 : i32
    %c0_i32_0 = arith.constant 0 : i32
    %c0_i32_1 = arith.constant 0 : i32
    return %c0_i32, %c0_i32_0 : i32, i32
  }
  func.func @transform_7(%arg0: i32) -> (i32, i32) {
    %c0_i32 = arith.constant 0 : i32
    %c0_i32_0 = arith.constant 0 : i32
    %c0_i32_1 = arith.constant 0 : i32
    return %c0_i32, %c0_i32_0 : i32, i32
  }
  func.func @transform_8(%arg0: i32) -> (i32, i32, i32) {
    %c0_i32 = arith.constant 0 : i32
    %c0_i32_0 = arith.constant 0 : i32
    %c0_i32_1 = arith.constant 0 : i32
    return %arg0, %c0_i32, %c0_i32_0 : i32, i32, i32
  }
}

</mosaic_0001>

<bundles_post_ra>
// kernel: basic_block.1
= control target key start
LH: loop header
LB: loop body
LE: loop exit
PB: predicated region body
PF: predicated region fallthrough
CT: control target
= control target key end

     0   :  { %s3866_s27 = smov 0   ;;  %s4981_s0 = inlined_call_operand.vmem [shape: f32[2,8,400], index: 0, kind: input, shape index: {}]   ;;  %s4982_s1 = inlined_call_operand.vmem [shape: f32[9,8,24], index: 1, kind: input, shape index: {}]   ;;  %s4983_s2 = inlined_call_operand.vmem [shape: f32[8,1], index: 2, kind: input, shape index: {}]   ;;  %s4984_s3 = inlined_call_operand.vmem [shape: f32[8,1], index: 3, kind: input, shape index: {}]   ;;  %s4985_s4 = inlined_call_operand.vmem [shape: f32[9,8,24], index: 4, kind: input, shape index: {}]   ;;  %s4986_s5 = inlined_call_operand.vmem [shape: f32[8,1], index: 5, kind: input, shape index: {}]   ;;  %s4987_s6 = inlined_call_operand.vmem [shape: f32[8,1], index: 6, kind: input, shape index: {}]   ;;  %s4988_s7 = inlined_call_operand.vmem [shape: f32[1,400], index: 7, kind: input, shape index: {}]   ;;  %s4989_s8 = inlined_call_operand.vmem [shape: f32[2,8,400], index: 8, kind: output, shape index: {}]  }
   0x1 LB: > { %s3026_s28 = sadd.s32 4294967295, %s3806_s27   ;;  %p3030_p0 = scmp.ge.s32.totalorder %s3806_s27, 1  ;;  %s3806_s27 = sphi %s3866_s27, %s18_s27  }
   0x2   : > { %p262_p1 = scmp.lt.s32.totalorder %s3806_s27, 3 }
   0x4   : > { %p263_p2 = pnand %p3030_p0, %p262_p1 }
   0x5   : > { %p296_p3 = scmp.lt.s32.totalorder (!%p263_p2), %s3026_s28, 1  ;;  %s3809_s11 = smov (!%p263_p2), 126  }
   0x6   : > { %266 = sbr.rel (%p263_p2) target bundleno = 1052 (0x41c), region = 52  ;;  %s3810_s12 = smov (!%p263_p2), 127  }
   0x7   : > { %s3811_s13 = smov (!%p263_p2), 101   ;;  %s3812_s14 = smov (!%p263_p2), 111  }
   0x8   : > { %s3813_s15 = smov (!%p263_p2), 91   ;;  %s3814_s16 = smov (!%p263_p2), 1  }
   0x9   : > { %s3815_s17 = smov (!%p263_p2), 11   ;;  %s3816_s18 = smov (!%p263_p2), 119  }
   0xa   : > { %s3817_s19 = smov (!%p263_p2), 39   ;;  %s3818_s20 = smov (!%p263_p2), 29  }
   0xb   : > { %vm312_vm0 = vcmask 1047680   ;;  %v3808_v0 = vmov 0.0   ;;  %s4991_s28 = smov (!%p296_p3, %s3026_s28), 1  ;;  %vm314_vm1 = vcmask 130048   ;;  %vm383_vm2 = vcmask 826368   ;;  %s3819_s21 = smov 19  }
   0xc   : > { %311 = vst [vmem:[#allocation2] sm:$0xff] %v3808_v0  ;;  %s3125_s29 = sshll.u32 %s4991_s28, 5  ;;  %vm340_vm3 = vcmask 1039360   ;;  %vm352_vm4 = vcmask 1031168   ;;  %vm513_vm5 = vcmask 908288   ;;  %vm644_vm6 = vcmask 744448  }
   0xd   : > { %313 = vst.msk [vmem:[#allocation2 + $0x20] sm:$0xff] %vm312_vm0, %v3808_v0  ;;  %s3882_s10 = scalar_lea.vmem %s4981_s0, %s3125_s29  ;;  %vm967_vm7 = vcmask 7168   ;;  %vm1105_vm8 = vcmask 973824   ;;  %vm823_vm9 = vcmask 89088   ;;  %vm405_vm10 = vcmask 195584  }
   0xe   : > { %v3885_v1 = vld [vmem:[%s3882_s10] sm:$0xff]  ;;  %v3888_v2 = vld [vmem:[%s3882_s10 + $0x18] sm:$0xff]  ;;  %v3896_v4 = vld [vmem:[%s3882_s10 + $0x8] sm:$0xff]  ;;  %vm1240_vm11 = vcmask 318464   ;;  %vm1375_vm12 = vcmask 236544   ;;  %vm1510_vm13 = vcmask 154624  }
   0xf   : > { %323 = vst.msk [vmem:[#allocation2 + $0x20] sm:$0xff] %vm314_vm1, %v3888_v2  ;;  %v3158_v3 = vpack.i.bf16 %v3885_v1, %v3808_v0  ;;  %v318_v5 = vld [vmem:[%s3882_s10 + $0x10] sm:$0xff]  ;;  %v3243_v10 = vpack.i.bf16 %v3896_v4, %v3885_v1 }
  0x10   : > { %v3163_v6 = vpack.i.bf16 %v318_v5, %v3896_v4 }
  0x11   : > { %3159 = vrot.lane.b32.xlu1 %v3158_v3, %s3809_s11  ;;  %3149 = vrot.lane.b32.xlu0 %v3158_v3, %s3810_s12 }
  0x12   : > { %3169 = vrot.lane.b32.xlu2 %v3158_v3, %s3811_s13 }
  0x16   : > { %v3903_v7 = vld [vmem:[#allocation2 + $0x20] sm:$0xff] }
  0x17   : > { %v3208_v8 = vpack.i.bf16 0.0, %v3903_v7  ;;  %v3923_v9 = vpack.i.bf16 %v3903_v7, %v318_v5 }
  0x19   : > { %3164 = vrot.lane.b32.xlu1 %v3163_v6, %s3809_s11  ;;  %3154 = vrot.lane.b32.xlu0 %v3163_v6, %s3810_s12 }
  0x1a   : > { %3174 = vrot.lane.b32.xlu2 %v3163_v6, %s3811_s13 }
  0x21   : > { %3179 = vrot.lane.b32.xlu1 %v3158_v3, %s3812_s14  ;;  %3209 = vrot.lane.b32.xlu0 %v3208_v8, %s3810_s12 }
  0x22   : > { %3184 = vrot.lane.b32.xlu2 %v3163_v6, %s3812_s14 }
  0x29   : > { %3189 = vrot.lane.b32.xlu1 %v3158_v3, %s3813_s15  ;;  %785 = vrot.lane.b32.xlu0 %v3903_v7, %s3809_s11 }
  0x2a   : > { %3194 = vrot.lane.b32.xlu2 %v3163_v6, %s3813_s15 }
  0x31   : > { %3199 = vrot.lane.b32.xlu1 %v3158_v3, %s3810_s12  ;;  %3234 = vrot.lane.b32.xlu0 %v3158_v3, %s3814_s16 }
  0x32   : > { %3204 = vrot.lane.b32.xlu2 %v3163_v6, %s3810_s12 }
  0x39   : > { %3214 = vrot.lane.b32.xlu1 %v3158_v3, %s3809_s11  ;;  %3249 = vrot.lane.b32.xlu0 %v3923_v9, %s3816_s18 }
  0x3a   : > { %3219 = vrot.lane.b32.xlu2 %v3163_v6, %s3809_s11 }
  0x41   : > { %3224 = vrot.lane.b32.xlu1 %v3158_v3, %s3815_s17 }
  0x42   : > { %3229 = vrot.lane.b32.xlu2 %v3163_v6, %s3815_s17 }
  0x49   : > { %3239 = vrot.lane.b32.xlu1 %v3163_v6, %s3814_s16 }
  0x4a   : > { %3244 = vrot.lane.b32.xlu2 %v3243_v10, %s3816_s18 }
  0x52   : > { %3254 = vrot.lane.b32.xlu2 %v3243_v10, %s3817_s19 }
  0x6c   : > { %v3930_v11 = vpop.permute.xlu2 %3169 }
  0x6d   : > { %v3172_v13 = vunpack.i.h.bf16 %v3930_v11 }
  0x74   : > { %v3933_v12 = vpop.permute.xlu2 %3174 }
  0x75   : > { %v3176_v14 = vunpack.i.l.bf16 %v3933_v12 }
  0x77   : > { %v3942_v15 = vsel %vm383_vm2, %v3172_v13, %v3176_v14 }
  0x7c   : > { %v3946_v26 = vpop.permute.xlu2 %3184 }
  0x7d   : > { %v3186_v29 = vunpack.i.l.bf16 %v3946_v26 }
  0x83   : > { %v3160_v16 = vpop.permute.xlu1 %3159  ;;  %v3150_v17 = vpop.permute.xlu0 %3149 }
  0x84   : > { %v3152_v18 = vunpack.i.h.bf16 %v3150_v17  ;;  %v3151_v19 = vunpack.i.l.bf16 %v3150_v17  ;;  %v3963_v36 = vpop.permute.xlu2 %3194  ;;  %v3162_v48 = vunpack.i.h.bf16 %v3160_v16  ;;  %v3161_v49 = vunpack.i.l.bf16 %v3160_v16 }
  0x85   : > { %v3196_v37 = vunpack.i.l.bf16 %v3963_v36 }
  0x86   : > { %v341_v24 = vsel %vm340_vm3, %v3151_v19, %v3152_v18  ;;  %v353_v50 = vsel %vm352_vm4, %v3161_v49, %v3162_v48 }
  0x8b   : > { %v3165_v20 = vpop.permute.xlu1 %3164  ;;  %v3155_v21 = vpop.permute.xlu0 %3154 }
  0x8c   : > { %v3156_v22 = vunpack.i.l.bf16 %v3155_v21  ;;  %v3167_v23 = vunpack.i.h.bf16 %v3165_v20  ;;  %v3166_v28 = vunpack.i.l.bf16 %v3165_v20  ;;  %v3157_v38 = vunpack.i.h.bf16 %v3155_v21  ;;  %v3205_v52 = vpop.permute.xlu2 %3204 }
  0x8d   : > { %v3206_v54 = vunpack.i.l.bf16 %v3205_v52  ;;  %v3207_v55 = vunpack.i.h.bf16 %v3205_v52 }
  0x8e   : > { %v342_v25 = vsel %vm340_vm3, %v3152_v18, %v3156_v22  ;;  %v355_v30 = vsel %vm352_vm4, %v3166_v28, %v3167_v23  ;;  %v343_v43 = vsel %vm340_vm3, %v3156_v22, %v3157_v38  ;;  %v354_v51 = vsel %vm352_vm4, %v3162_v48, %v3166_v28 }
  0x8f   : > { %v3263_v27 = vpack.i.bf16 %v342_v25, %v341_v24  ;;  %v3278_v34 = vpack.i.bf16 %v3167_v23, %v355_v30  ;;  %v3268_v44 = vpack.i.bf16 %v3157_v38, %v343_v43  ;;  %v3273_v53 = vpack.i.bf16 %v354_v51, %v353_v50 }
  0x90   : > { %v3996_v56 = vsel %vm340_vm3, %v3206_v54, %v3207_v55 }
  0x91   : > { %3264 = vrot.lane.b32.xlu0 %v3263_v27, %s3811_s13 }
  0x93   : > { %v3951_v31 = vpop.permute.xlu1 %3179  ;;  %v3953_v32 = vpop.permute.xlu0 %3209 }
  0x94   : > { %v3182_v33 = vunpack.i.h.bf16 %v3951_v31  ;;  %v3220_v59 = vpop.permute.xlu2 %3219  ;;  %v3211_v6 = vunpack.i.l.bf16 %v3953_v32 }
  0x95   : > { %v3222_v62 = vunpack.i.h.bf16 %v3220_v59  ;;  %v3221_v63 = vunpack.i.l.bf16 %v3220_v59 }
  0x96   : > { %v3961_v35 = vsel %vm513_vm5, %v3182_v33, %v3186_v29  ;;  %v776_v19 = vsel %vm340_vm3, %v3207_v55, %v3211_v6 }
  0x97   : > { %v789_v8 = vsel %vm352_vm4, %v3221_v63, %v3222_v62  ;;  %v3333_v21 = vpack.i.bf16 %v3211_v6, %v776_v19 }
  0x99   : > { %3279 = vrot.lane.b32.xlu0 %v3278_v34, %s3811_s13 }
  0x9b   : > { %v3967_v39 = vpop.permute.xlu1 %3189  ;;  %v3969_v40 = vpop.permute.xlu0 %785 }
  0x9c   : > { %v3192_v41 = vunpack.i.h.bf16 %v3967_v39  ;;  %965 = vrot.lane.b32.xlu1 %v3969_v40, %s3814_s16  ;;  %821 = vrot.lane.b32.xlu2 %v3969_v40, %s3815_s17  ;;  %v790_v10 = vsel %vm352_vm4, %v3222_v62, %v3969_v40  ;;  %v4025_v24 = vpop.permute.xlu2 %3229  ;;  %v3408_v51 = vpack.i.bf16 %v789_v8, %v3969_v40 }
  0x9d   : > { %v3343_v17 = vpack.i.bf16 %v790_v10, %v789_v8  ;;  %v3388_v38 = vpack.i.bf16 %v3969_v40, %v790_v10  ;;  %v3231_v49 = vunpack.i.l.bf16 %v4025_v24 }
  0x9e   : > { %v3981_v42 = vsel %vm644_vm6, %v3192_v41, %v3196_v37 }
  0xa1   : > { %3284 = vrot.lane.b32.xlu0 %v3263_v27, %s3812_s14 }
  0xa3   : > { %v3200_v45 = vpop.permute.xlu1 %3199 }
  0xa4   : > { %v3202_v46 = vunpack.i.h.bf16 %v3200_v45  ;;  %3269 = vrot.lane.b32.xlu1 %v3268_v44, %s3811_s13  ;;  %v3201_v58 = vunpack.i.l.bf16 %v3200_v45 }
  0xa6   : > { %v3258_v47 = vpack.i.bf16 %v3202_v46, %v3903_v7  ;;  %v3999_v57 = vsel %vm340_vm3, %v3202_v46, %v3206_v54  ;;  %v773_v61 = vsel %vm340_vm3, %v3201_v58, %v3202_v46 }
  0xa7   : > { %v3328_v60 = vpack.i.bf16 %v3996_v56, %v3999_v57  ;;  %v3323_v3 = vpack.i.bf16 %v773_v61, %v3903_v7 }
  0xa8   : > { %3259 = vrot.lane.b32.xlu2 %v3258_v47, %s3814_s16 }
  0xa9   : > { %3299 = vrot.lane.b32.xlu0 %v3278_v34, %s3812_s14 }
  0xab   : > { %v3215_v0 = vpop.permute.xlu1 %3214 }
  0xac   : > { %3289 = vrot.lane.b32.xlu1 %v3268_v44, %s3812_s14  ;;  %v3216_v5 = vunpack.i.l.bf16 %v3215_v0  ;;  %v3217_v16 = vunpack.i.h.bf16 %v3215_v0 }
  0xae   : > { %v787_v18 = vsel %vm352_vm4, %v3216_v5, %v3217_v16  ;;  %v788_v7 = vsel %vm352_vm4, %v3217_v16, %v3221_v63 }
  0xaf   : > { %v3338_v20 = vpack.i.bf16 %v788_v7, %v787_v18  ;;  %v3358_v23 = vpack.i.bf16 %v788_v7, %v3217_v16  ;;  %v3378_v47 = vpack.i.bf16 %v789_v8, %v788_v7  ;;  %v3403_v55 = vpack.i.bf16 %v790_v10, %v788_v7 }
  0xb0   : > { %3274 = vrot.lane.b32.xlu2 %v3273_v53, %s3811_s13  ;;  %v3438_v58 = vpack.i.bf16 %v788_v7, %v3896_v4  ;;  %v3171_v10 = vunpack.i.l.bf16 %v3930_v11  ;;  %v3035_v7 = vld [vmem:[%s4982_s1 + $0x8] sm:$0xff] }
  0xb1   : > { %3304 = vrot.lane.b32.xlu0 %v3263_v27, %s3813_s15  ;;  %v4029_v27 = vpop.permute.xlu0 %3234 }
  0xb2   : > { %v3237_v30 = vunpack.i.h.bf16 %v4029_v27 }
  0xb3   : > { %v4020_v22 = vpop.permute.xlu1 %3224 }
  0xb4   : > { %3309 = vrot.lane.b32.xlu1 %v3268_v44, %s3813_s15  ;;  %v4046_v44 = vpop.permute.xlu2 %3244  ;;  %v3227_v50 = vunpack.i.h.bf16 %v4020_v22 }
  0xb5   : > { %v3247_v45 = vunpack.i.h.bf16 %v4046_v44 }
  0xb6   : > { %v4072_v52 = vsel %vm823_vm9, %v3227_v50, %v3231_v49 }
  0xb8   : > { %3294 = vrot.lane.b32.xlu2 %v3273_v53, %s3812_s14 }
  0xb9   : > { %3319 = vrot.lane.b32.xlu0 %v3278_v34, %s3813_s15  ;;  %v4044_v43 = vpop.permute.xlu0 %3249 }
  0xba   : > { %v3251_v46 = vunpack.i.l.bf16 %v4044_v43 }
  0xbb   : > { %v4027_v25 = vpop.permute.xlu1 %3239 }
  0xbc   : > { %3329 = vrot.lane.b32.xlu1 %v3328_v60, %s3815_s17  ;;  %v3241_v28 = vunpack.i.l.bf16 %v4027_v25  ;;  %v4057_v48 = vsel %vm1105_vm8, %v3247_v45, %v3251_v46  ;;  %v4076_v54 = vpop.permute.xlu2 %3254 }
  0xbe   : > { %v4040_v34 = vsel %vm967_vm7, %v3237_v30, %v3241_v28 }
  0xc0   : > { %3314 = vrot.lane.b32.xlu2 %v3273_v53, %s3813_s15  ;;  %v3428_v53 = vpack.i.bf16 %v3996_v56, %v789_v8  ;;  %v3242_v56 = vunpack.i.h.bf16 %v4027_v25 }
  0xc1   : > { %3324 = vrot.lane.b32.xlu0 %v3323_v3, %s3815_s17 }
  0xc4   : > { %3344 = vrot.lane.b32.xlu1 %v3343_v17, %s3815_s17 }
  0xc8   : > { %3334 = vrot.lane.b32.xlu2 %v3333_v21, %s3815_s17 }
  0xc9   : > { %3339 = vrot.lane.b32.xlu0 %v3338_v20, %s3815_s17  ;;  %v384_v20 = vsel %vm383_vm2, %v3171_v10, %v3172_v13  ;;  %v3177_v13 = vunpack.i.h.bf16 %v3933_v12 }
  0xcc   : > { %3354 = vrot.lane.b32.xlu1 %v3333_v21, %s3814_s16 }
  0xd0   : > { %3359 = vrot.lane.b32.xlu2 %v3358_v23, %s3814_s16 }
  0xd1   : > { %3349 = vrot.lane.b32.xlu0 %v3328_v60, %s3814_s16 }
  0xd4   : > { %3369 = vrot.lane.b32.xlu1 %v3328_v60, %s3816_s18 }
  0xd8   : > { %3374 = vrot.lane.b32.xlu2 %v3333_v21, %s3816_s18 }
  0xd9   : > { %3364 = vrot.lane.b32.xlu0 %v3343_v17, %s3814_s16 }
  0xdc   : > { %3389 = vrot.lane.b32.xlu1 %v3388_v38, %s3816_s18 }
  0xe0   : > { %3399 = vrot.lane.b32.xlu2 %v3333_v21, %s3817_s19 }
  0xe1   : > { %3379 = vrot.lane.b32.xlu0 %v3378_v47, %s3816_s18 }
  0xe4   : > { %3394 = vrot.lane.b32.xlu1 %v3328_v60, %s3817_s19  ;;  %v3453_v60 = vpack.i.bf16 %v3885_v1, %v3999_v57 }
  0xe8   : > { %3414 = vrot.lane.b32.xlu2 %v3388_v38, %s3818_s20 }
  0xe9   : > { %3384 = vrot.lane.b32.xlu0 %v3923_v9, %s3817_s19 }
  0xec   : > { %3409 = vrot.lane.b32.xlu1 %v3408_v51, %s3817_s19 }
  0xf0   : > { %3429 = vrot.lane.b32.xlu2 %v3428_v53, %s3818_s20 }
  0xf1   : > { %3404 = vrot.lane.b32.xlu0 %v3403_v55, %s3817_s19 }
  0xf4   : > { %3424 = vrot.lane.b32.xlu1 %v3923_v9, %s3818_s20 }
  0xf6   : > { %v4083_v40 = vpop.permute.xlu2 %821 }
  0xf8   : > { %3444 = vrot.lane.b32.xlu2 %v3333_v21, %s3819_s21 }
  0xf9   : > { %3419 = vrot.lane.b32.xlu0 %v3333_v21, %s3818_s20 }
  0xfc   : > { %3439 = vrot.lane.b32.xlu1 %v3438_v58, %s3818_s20 }
 0x100   : > { %3459 = vrot.lane.b32.xlu2 %v3428_v53, %s3819_s21 }
 0x101   : > { %3434 = vrot.lane.b32.xlu0 %v3388_v38, %s3819_s21 }
 0x102   : > { %v4091_v59 = vpop.permute.xlu2 %3259 }
 0x103   : > { %v3261_v61 = vunpack.i.l.bf16 %v4091_v59  ;;  %v3265_v62 = vpop.permute.xlu0 %3264 }
 0x104   : > { %3454 = vrot.lane.b32.xlu1 %v3453_v60, %s3818_s20  ;;  %v3267_v0 = vunpack.i.h.bf16 %v3265_v62  ;;  %v3266_v3 = vunpack.i.l.bf16 %v3265_v62 }
 0x105   : > { %v4100_v4 = vsel %vm967_vm7, %v3242_v56, %v3261_v61 }
 0x106   : > { %v387_v19 = vsel %vm383_vm2, %v3266_v3, %v3267_v0 }
 0x109   : > { %3449 = vrot.lane.b32.xlu0 %v3923_v9, %s3819_s21 }
 0x10a   : > { %v3275_v63 = vpop.permute.xlu2 %3274 }
 0x10b   : > { %v3277_v5 = vunpack.i.h.bf16 %v3275_v63  ;;  %v3276_v6 = vunpack.i.l.bf16 %v3275_v63  ;;  %v3280_v8 = vpop.permute.xlu0 %3279 }
 0x10c   : > { %v3281_v1 = vunpack.i.l.bf16 %v3280_v8  ;;  %3469 = vrot.lane.b32.xlu1 %v3453_v60, %s3819_s21  ;;  %v3282_v57 = vunpack.i.h.bf16 %v3280_v8  ;;  %v3181_v60 = vunpack.i.l.bf16 %v3951_v31 }
 0x10d   : > { %v390_v16 = vsel %vm383_vm2, %v3276_v6, %v3277_v5 }
 0x10e   : > { %v4107_v17 = vpop.permute.xlu1 %965  ;;  %422 = vmatpush.msra.mxu0 %v390_v16  ;;  %482 = vmatpush.msra.mxu3 %v3282_v57  ;;  %v391_v9 = vsel %vm383_vm2, %v3277_v5, %v3281_v1  ;;  %v392_v18 = vsel %vm383_vm2, %v3281_v1, %v3282_v57  ;;  %v514_v6 = vsel %vm513_vm5, %v3181_v60, %v3182_v33  ;;  %v356_v33 = vld [vmem:[%s4982_s1] sm:$0xff] }
 0x10f   : > { %442 = vmatpush.msra.mxu1 %v391_v9  ;;  %462 = vmatpush.msra.mxu2 %v392_v18 }
 0x110   : > { %423 = vmatpush.msra.mxu0 %v387_v19  ;;  %v3187_v19 = vunpack.i.h.bf16 %v3946_v26  ;;  %v3044_v26 = vld [vmem:[%s4982_s1 + $0x10] sm:$0xff] }
 0x111   : > { %3464 = vrot.lane.b32.xlu0 %v3438_v58, %s3819_s21 }
 0x112   : > { %v3295_v21 = vpop.permute.xlu2 %3294  ;;  %424 = vmatpush.msra.mxu0 %v384_v20 }
 0x113   : > { %v3297_v23 = vunpack.i.h.bf16 %v3295_v21  ;;  %v3296_v38 = vunpack.i.l.bf16 %v3295_v21  ;;  %v3285_v47 = vpop.permute.xlu0 %3284  ;;  %3036 = vmatmul.msk.f32.vlgmr.msra.gmra.mxu0 %vm405_vm10, %v3035_v7 }
 0x114   : > { %v3287_v51 = vunpack.i.h.bf16 %v3285_v47  ;;  %v3286_v53 = vunpack.i.l.bf16 %v3285_v47  ;;  %v3191_v47 = vunpack.i.l.bf16 %v3967_v39 }
 0x115   : > { %v520_v55 = vsel %vm513_vm5, %v3296_v38, %v3297_v23  ;;  %v516_v38 = vsel %vm513_vm5, %v3186_v29, %v3187_v19 }
 0x116   : > { %v3270_v61 = vpop.permute.xlu1 %3269  ;;  %551 = vmatpush.msrb.mxu0 %v520_v55  ;;  %v517_v58 = vsel %vm513_vm5, %v3286_v53, %v3287_v51  ;;  %v645_v29 = vsel %vm644_vm6, %v3191_v47, %v3192_v41 }
 0x117   : > { %v3271_v11 = vunpack.i.l.bf16 %v3270_v61  ;;  %v3272_v62 = vunpack.i.h.bf16 %v3270_v61 }
 0x118   : > { %552 = vmatpush.msrb.mxu0 %v517_v58 }
 0x119   : > { %483 = vmatpush.msra.mxu3 %v3272_v62  ;;  %v388_v63 = vsel %vm383_vm2, %v3267_v0, %v3271_v11  ;;  %v389_v3 = vsel %vm383_vm2, %v3271_v11, %v3272_v62  ;;  %v386_v0 = vsel %vm383_vm2, %v3176_v14, %v3177_v13 }
 0x11a   : > { %v4126_v5 = vpop.permute.xlu2 %3314  ;;  %443 = vmatpush.msra.mxu1 %v388_v63  ;;  %463 = vmatpush.msra.mxu2 %v389_v3 }
 0x11b   : > { %v3317_v8 = vunpack.i.h.bf16 %v4126_v5  ;;  %v3316_v1 = vunpack.i.l.bf16 %v4126_v5  ;;  %553 = vmatpush.msrb.mxu0 %v514_v6  ;;  %v3300_v57 = vpop.permute.xlu0 %3299  ;;  %484 = vmatpush.msra.mxu3 %v3177_v13  ;;  %v3197_v13 = vunpack.i.h.bf16 %v3963_v36 }
 0x11c   : > { %v3301_v10 = vunpack.i.l.bf16 %v3300_v57  ;;  %444 = vmatpush.msra.mxu1 %v3942_v15  ;;  %464 = vmatpush.msra.mxu2 %v386_v0  ;;  %v3302_v16 = vunpack.i.h.bf16 %v3300_v57 }
 0x11d   : > { %v651_v31 = vsel %vm644_vm6, %v3316_v1, %v3317_v8  ;;  %3039 = vmatmul.msk.f32.vlgmr.msra.gmra.mxu3 %vm405_vm10, %v3035_v7  ;;  %3037 = vmatmul.msk.f32.vlgmr.msra.gmra.mxu1 %vm405_vm10, %v3035_v7  ;;  %v647_v6 = vsel %vm644_vm6, %v3196_v37, %v3197_v13  ;;  %v3232_v37 = vunpack.i.h.bf16 %v4025_v24  ;;  %v3049_v24 = vld [vmem:[%s4982_s1 + $0x18] sm:$0xff] }
 0x11e   : > { %v3290_v9 = vpop.permute.xlu1 %3289  ;;  %611 = vmatpush.msrb.mxu3 %v3302_v16  ;;  %682 = vmatpush.msra.mxu0 %v651_v31  ;;  %v521_v12 = vsel %vm513_vm5, %v3297_v23, %v3301_v10  ;;  %v522_v14 = vsel %vm513_vm5, %v3301_v10, %v3302_v16 }
 0x11f   : > { %v3291_v15 = vunpack.i.l.bf16 %v3290_v9  ;;  %571 = vmatpush.msrb.mxu1 %v521_v12  ;;  %591 = vmatpush.msrb.mxu2 %v522_v14  ;;  %v3292_v18 = vunpack.i.h.bf16 %v3290_v9 }
 0x120   : > { %3038 = vmatmul.msk.f32.vlgmr.msra.gmra.mxu2 %vm405_vm10, %v3035_v7  ;;  %3040 = vmatmul.msk.f32.vlgmr.msrb.gmra.mxu0 %vm405_vm10, %v356_v33 }
 0x121   : > { %612 = vmatpush.msrb.mxu3 %v3292_v18  ;;  %v518_v20 = vsel %vm513_vm5, %v3287_v51, %v3291_v15  ;;  %v519_v21 = vsel %vm513_vm5, %v3291_v15, %v3292_v18 }
 0x122   : > { %572 = vmatpush.msrb.mxu1 %v518_v20  ;;  %592 = vmatpush.msrb.mxu2 %v519_v21 }
 0x123   : > { %v3305_v23 = vpop.permute.xlu0 %3304  ;;  %613 = vmatpush.msrb.mxu3 %v3187_v19 }
 0x124   : > { %v3307_v53 = vunpack.i.h.bf16 %v3305_v23  ;;  %v3306_v55 = vunpack.i.l.bf16 %v3305_v23  ;;  %573 = vmatpush.msrb.mxu1 %v3961_v35  ;;  %593 = vmatpush.msrb.mxu2 %v516_v38  ;;  %v3335_v35 = vpop.permute.xlu2 %3334  ;;  %v826_v23 = vsel %vm823_vm9, %v3231_v49, %v3232_v37 }
 0x125   : > { %3043 = vmatmul.msk.f32.vlgmr.msrb.gmra.mxu3 %vm405_vm10, %v356_v33  ;;  %3041 = vmatmul.msk.f32.vlgmr.msrb.gmra.mxu1 %vm405_vm10, %v356_v33  ;;  %v3337_v57 = vunpack.i.h.bf16 %v3335_v35  ;;  %v3336_v10 = vunpack.i.l.bf16 %v3335_v35 }
 0x126   : > { %v3310_v7 = vpop.permute.xlu1 %3309  ;;  %v648_v51 = vsel %vm644_vm6, %v3306_v55, %v3307_v53 }
 0x127   : > { %683 = vmatpush.msra.mxu0 %v648_v51  ;;  %v3312_v61 = vunpack.i.h.bf16 %v3310_v7  ;;  %v3311_v58 = vunpack.i.l.bf16 %v3310_v7  ;;  %v831_v15 = vsel %vm823_vm9, %v3336_v10, %v3337_v57 }
 0x128   : > { %3042 = vmatmul.msk.f32.vlgmr.msrb.gmra.mxu2 %vm405_vm10, %v356_v33 }
 0x129   : > { %684 = vmatpush.msra.mxu0 %v645_v29  ;;  %v649_v41 = vsel %vm644_vm6, %v3307_v53, %v3311_v58  ;;  %v650_v5 = vsel %vm644_vm6, %v3311_v58, %v3312_v61  ;;  %v3236_v58 = vunpack.i.l.bf16 %v4029_v27 }
 0x12a   : > { %3045 = vmatmul.msk.f32.vlgmr.msra.gmra.mxu0 %vm405_vm10, %v3044_v26 }
 0x12b   : > { %v3320_v60 = vpop.permute.xlu0 %3319 }
 0x12c   : > { %v3322_v11 = vunpack.i.h.bf16 %v3320_v60  ;;  %v3321_v62 = vunpack.i.l.bf16 %v3320_v60 }
 0x12e   : > { %v3330_v63 = vpop.permute.xlu1 %3329  ;;  %742 = vmatpush.msra.mxu3 %v3322_v11  ;;  %v652_v3 = vsel %vm644_vm6, %v3317_v8, %v3321_v62  ;;  %v653_v39 = vsel %vm644_vm6, %v3321_v62, %v3322_v11  ;;  %v4177_v8 = vpop.permute.xlu2 %3359  ;;  %v3262_v11 = vunpack.i.h.bf16 %v4091_v59  ;;  %v3054_v59 = vld [vmem:[%s4982_s1 + $0x20] sm:$0xff] }
 0x12f   : > { %702 = vmatpush.msra.mxu1 %v652_v3  ;;  %722 = vmatpush.msra.mxu2 %v653_v39  ;;  %v3332_v16 = vunpack.i.h.bf16 %v3330_v63  ;;  %v3331_v18 = vunpack.i.l.bf16 %v3330_v63  ;;  %v3362_v7 = vunpack.i.h.bf16 %v4177_v8  ;;  %v3361_v51 = vunpack.i.l.bf16 %v4177_v8 }
 0x130   : > { %743 = vmatpush.msra.mxu3 %v3312_v61 }
 0x131   : > { %703 = vmatpush.msra.mxu1 %v649_v41  ;;  %723 = vmatpush.msra.mxu2 %v650_v5  ;;  %v830_v14 = vsel %vm823_vm9, %v3332_v16, %v3336_v10  ;;  %v829_v29 = vsel %vm823_vm9, %v3331_v18, %v3332_v16  ;;  %v976_v61 = vsel %vm967_vm7, %v3361_v51, %v3362_v7 }
 0x132   : > { %744 = vmatpush.msra.mxu3 %v3197_v13 }
 0x133   : > { %v3325_v1 = vpop.permute.xlu0 %3324  ;;  %704 = vmatpush.msra.mxu1 %v3981_v42  ;;  %724 = vmatpush.msra.mxu2 %v647_v6 }
 0x134   : > { %3046 = vmatmul.msk.f32.vlgmr.msra.gmra.mxu1 %vm405_vm10, %v3044_v26  ;;  %3048 = vmatmul.msk.f32.vlgmr.msra.gmra.mxu3 %vm405_vm10, %v3044_v26  ;;  %v3326_v33 = vunpack.i.l.bf16 %v3325_v1  ;;  %v3327_v19 = vunpack.i.h.bf16 %v3325_v1 }
 0x135   : > { %3047 = vmatmul.msk.f32.vlgmr.msra.gmra.mxu2 %vm405_vm10, %v3044_v26 }
 0x136   : > { %v3345_v0 = vpop.permute.xlu1 %3344  ;;  %v827_v38 = vsel %vm823_vm9, %v3232_v37, %v3326_v33  ;;  %v4195_v26 = vpop.permute.xlu2 %3374  ;;  %v828_v49 = vsel %vm823_vm9, %v3327_v19, %v3331_v18 }
 0x137   : > { %v3347_v31 = vunpack.i.h.bf16 %v3345_v0  ;;  %v3346_v36 = vunpack.i.l.bf16 %v3345_v0  ;;  %v3376_v37 = vunpack.i.l.bf16 %v4195_v26 }
 0x139   : > { %v834_v42 = vsel %vm823_vm9, %v3346_v36, %v3347_v31  ;;  %v835_v9 = vsel %vm823_vm9, %v3347_v31, %v4083_v40  ;;  %v3226_v40 = vunpack.i.l.bf16 %v4020_v22 }
 0x13a   : > { %904 = vmatpush.msrb.mxu2 %v834_v42  ;;  %924 = vmatpush.msrb.mxu3 %v835_v9  ;;  %v3252_v9 = vunpack.i.h.bf16 %v4044_v43 }
 0x13b   : > { %v3340_v12 = vpop.permute.xlu0 %3339  ;;  %v824_v35 = vsel %vm823_vm9, %v3226_v40, %v3227_v50  ;;  %v968_v50 = vsel %vm967_vm7, %v3236_v58, %v3237_v30 }
 0x13c   : > { %v3342_v20 = vunpack.i.h.bf16 %v3340_v12  ;;  %v3341_v21 = vunpack.i.l.bf16 %v3340_v12  ;;  %905 = vmatpush.msrb.mxu2 %v830_v14  ;;  %925 = vmatpush.msrb.mxu3 %v831_v15 }
 0x13e   : > { %v3355_v47 = vpop.permute.xlu1 %3354  ;;  %906 = vmatpush.msrb.mxu2 %v826_v23  ;;  %926 = vmatpush.msrb.mxu3 %v827_v38  ;;  %v832_v53 = vsel %vm823_vm9, %v3341_v21, %v3342_v20  ;;  %v833_v55 = vsel %vm823_vm9, %v3342_v20, %v3346_v36  ;;  %v3377_v36 = vunpack.i.h.bf16 %v4195_v26  ;;  %v1108_v20 = vsel %vm1105_vm8, %v3251_v46, %v3252_v9  ;;  %v3059_v38 = vld [vmem:[%s4982_s1 + $0x28] sm:$0xff] }
 0x13f   : > { %864 = vmatpush.msrb.mxu0 %v832_v53  ;;  %884 = vmatpush.msrb.mxu1 %v833_v55  ;;  %v3357_v5 = vunpack.i.h.bf16 %v3355_v47  ;;  %v3356_v6 = vunpack.i.l.bf16 %v3355_v47 }
 0x140   : > { %3053 = vmatmul.msk.f32.vlgmr.msrb.gmra.mxu3 %vm405_vm10, %v3049_v24  ;;  %3052 = vmatmul.msk.f32.vlgmr.msrb.gmra.mxu2 %vm405_vm10, %v3049_v24 }
 0x141   : > { %865 = vmatpush.msrb.mxu0 %v828_v49  ;;  %885 = vmatpush.msrb.mxu1 %v829_v29  ;;  %v975_v31 = vsel %vm967_vm7, %v3356_v6, %v3357_v5  ;;  %v3257_v29 = vunpack.i.h.bf16 %v4076_v54 }
 0x143   : > { %v3350_v60 = vpop.permute.xlu0 %3349  ;;  %866 = vmatpush.msrb.mxu0 %v824_v35  ;;  %886 = vmatpush.msrb.mxu1 %v4072_v52  ;;  %v4219_v52 = vpop.permute.xlu2 %3399  ;;  %v3256_v35 = vunpack.i.l.bf16 %v4076_v54 }
 0x144   : > { %v3351_v62 = vunpack.i.l.bf16 %v3350_v60  ;;  %3051 = vmatmul.msk.f32.vlgmr.msrb.gmra.mxu1 %vm405_vm10, %v3049_v24  ;;  %3050 = vmatmul.msk.f32.vlgmr.msrb.gmra.mxu0 %vm405_vm10, %v3049_v24  ;;  %v3352_v3 = vunpack.i.h.bf16 %v3350_v60  ;;  %v3402_v55 = vunpack.i.h.bf16 %v4219_v52  ;;  %v3401_v60 = vunpack.i.l.bf16 %v4219_v52 }
 0x145   : > { %1008 = vmatpush.msra.mxu0 %v976_v61  ;;  %v3064_v61 = vld [vmem:[%s4982_s1 + $0x30] sm:$0xff] }
 0x146   : > { %v4213_v13 = vpop.permute.xlu1 %3369  ;;  %v972_v22 = vsel %vm967_vm7, %v3262_v11, %v3351_v62  ;;  %v973_v10 = vsel %vm967_vm7, %v3351_v62, %v3352_v3  ;;  %v974_v16 = vsel %vm967_vm7, %v3352_v3, %v3356_v6  ;;  %v1246_v3 = vsel %vm1240_vm11, %v3401_v60, %v3402_v55 }
 0x147   : > { %1009 = vmatpush.msra.mxu0 %v972_v22  ;;  %v3372_v25 = vunpack.i.h.bf16 %v4213_v13 }
 0x149   : > { %1010 = vmatpush.msra.mxu0 %v968_v50  ;;  %v1110_v23 = vsel %vm1105_vm8, %v3372_v25, %v3376_v37 }
 0x14b   : > { %v3365_v63 = vpop.permute.xlu0 %3364  ;;  %v4239_v33 = vpop.permute.xlu2 %3414 }
 0x14c   : > { %v3367_v39 = vunpack.i.h.bf16 %v3365_v63  ;;  %v3366_v41 = vunpack.i.l.bf16 %v3365_v63  ;;  %3055 = vmatmul.msk.f32.vlgmr.msra.gmra.mxu0 %vm405_vm10, %v3054_v59 }
 0x14e   : > { %v3390_v1 = vpop.permute.xlu1 %3389  ;;  %v977_v27 = vsel %vm967_vm7, %v3362_v7, %v3366_v41  ;;  %v978_v30 = vsel %vm967_vm7, %v3366_v41, %v3367_v39  ;;  %v979_v8 = vsel %vm967_vm7, %v3367_v39, %v4107_v17  ;;  %v970_v17 = vsel %vm967_vm7, %v3241_v28, %v3242_v56 }
 0x14f   : > { %1028 = vmatpush.msra.mxu1 %v977_v27  ;;  %1048 = vmatpush.msra.mxu2 %v978_v30  ;;  %v3392_v57 = vunpack.i.h.bf16 %v3390_v1  ;;  %v3391_v0 = vunpack.i.l.bf16 %v3390_v1  ;;  %v3371_v28 = vunpack.i.l.bf16 %v4213_v13  ;;  %v1241_v39 = vsel %vm1240_vm11, %v3256_v35, %v3257_v29 }
 0x150   : > { %1068 = vmatpush.msra.mxu3 %v979_v8 }
 0x151   : > { %1029 = vmatpush.msra.mxu1 %v973_v10  ;;  %1049 = vmatpush.msra.mxu2 %v974_v16  ;;  %v1114_v15 = vsel %vm1105_vm8, %v3391_v0, %v3392_v57  ;;  %v1109_v21 = vsel %vm1105_vm8, %v3371_v28, %v3372_v25 }
 0x152   : > { %1069 = vmatpush.msra.mxu3 %v975_v31 }
 0x153   : > { %v3380_v42 = vpop.permute.xlu0 %3379  ;;  %1030 = vmatpush.msra.mxu1 %v4040_v34  ;;  %1050 = vmatpush.msra.mxu2 %v970_v17  ;;  %v1111_v34 = vsel %vm1105_vm8, %v3376_v37, %v3377_v36  ;;  %v4266_v43 = vpop.permute.xlu2 %3429  ;;  %v307_v37 = vld [vmem:[%s4984_s3] sm:$0xff] }
 0x154   : > { %v3382_v12 = vunpack.i.h.bf16 %v3380_v42  ;;  %v3381_v14 = vunpack.i.l.bf16 %v3380_v42  ;;  %1070 = vmatpush.msra.mxu3 %v4100_v4  ;;  %3056 = vmatmul.msk.f32.vlgmr.msra.gmra.mxu1 %vm405_vm10, %v3054_v59  ;;  %v3246_v4 = vunpack.i.l.bf16 %v4046_v44  ;;  %v3417_v44 = vunpack.i.h.bf16 %v4239_v33 }
 0x155   : > { %1183 = vmatpush.msrb.mxu2 %v1114_v15  ;;  %3058 = vmatmul.msk.f32.vlgmr.msra.gmra.mxu3 %vm405_vm10, %v3054_v59  ;;  %v3431_v63 = vunpack.i.l.bf16 %v4266_v43  ;;  %v3432_v30 = vunpack.i.h.bf16 %v4266_v43 }
 0x156   : > { %1203 = vmatpush.msrb.mxu3 %v3392_v57  ;;  %v3395_v56 = vpop.permute.xlu1 %3394  ;;  %v1112_v18 = vsel %vm1105_vm8, %v3381_v14, %v3382_v12  ;;  %v1113_v19 = vsel %vm1105_vm8, %v3382_v12, %v3391_v0  ;;  %3057 = vmatmul.msk.f32.vlgmr.msra.gmra.mxu2 %vm405_vm10, %v3054_v59  ;;  %v1106_v47 = vsel %vm1105_vm8, %v3246_v4, %v3247_v45  ;;  %v3416_v59 = vunpack.i.l.bf16 %v4239_v33  ;;  %v3069_v12 = vld [vmem:[%s4982_s1 + $0x38] sm:$0xff] }
 0x157   : > { %1184 = vmatpush.msrb.mxu2 %v1111_v34  ;;  %1143 = vmatpush.msrb.mxu0 %v1112_v18  ;;  %v3397_v45 = vunpack.i.h.bf16 %v3395_v56  ;;  %v3396_v51 = vunpack.i.l.bf16 %v3395_v56  ;;  %v306_v18 = vld [vmem:[%s4983_s2] sm:$0xff] }
 0x158   : > { %1204 = vmatpush.msrb.mxu3 %v3377_v36  ;;  %1163 = vmatpush.msrb.mxu1 %v1113_v19  ;;  %v1383_v0 = vsel %vm1375_vm12, %v3431_v63, %v3416_v59  ;;  %v1384_v10 = vsel %vm1375_vm12, %v3416_v59, %v3417_v44 }
 0x159   : > { %1185 = vmatpush.msrb.mxu2 %v1108_v20  ;;  %1144 = vmatpush.msrb.mxu0 %v1109_v21  ;;  %v1244_v54 = vsel %vm1240_vm11, %v3396_v51, %v3397_v45  ;;  %v1245_v52 = vsel %vm1240_vm11, %v3397_v45, %v3401_v60  ;;  %v3074_v51 = vld [vmem:[%s4982_s1 + $0x40] sm:$0xff] }
 0x15a   : > { %1205 = vmatpush.msrb.mxu3 %v3252_v9  ;;  %1164 = vmatpush.msrb.mxu1 %v1110_v23  ;;  %v3820_v9 = vmov 0  }
 0x15b   : > { %v3385_v40 = vpop.permute.xlu0 %3384  ;;  %1145 = vmatpush.msrb.mxu0 %v1106_v47  ;;  %v4283_v50 = vpop.permute.xlu2 %3444  ;;  %3474 = vset.pattern.permute.xlu0 %v3820_v9 }
 0x15c   : > { %1165 = vmatpush.msrb.mxu1 %v4057_v48  ;;  %3060 = vmatmul.msk.f32.vlgmr.msrb.gmra.mxu0 %vm405_vm10, %v3059_v38  ;;  %v3387_v7 = vunpack.i.h.bf16 %v3385_v40  ;;  %v3386_v58 = vunpack.i.l.bf16 %v3385_v40  ;;  %v3447_v28 = vunpack.i.h.bf16 %v4283_v50  ;;  %v3446_v56 = vunpack.i.l.bf16 %v4283_v50 }
 0x15d   : > { %3061 = vmatmul.msk.f32.vlgmr.msrb.gmra.mxu1 %vm405_vm10, %v3059_v38  ;;  %3063 = vmatmul.msk.f32.vlgmr.msrb.gmra.mxu3 %vm405_vm10, %v3059_v38 }
 0x15e   : > { %v3410_v46 = vpop.permute.xlu1 %3409  ;;  %3062 = vmatmul.msk.f32.vlgmr.msrb.gmra.mxu2 %vm405_vm10, %v3059_v38  ;;  %v1242_v41 = vsel %vm1240_vm11, %v3257_v29, %v3386_v58  ;;  %v1243_v27 = vsel %vm1240_vm11, %v3386_v58, %v3387_v7  ;;  %1630 = vperm.xlu0 %3474, %v307_v37  }
 0x15f   : > { %v3411_v53 = vunpack.i.l.bf16 %v3410_v46  ;;  %v3412_v26 = vunpack.i.h.bf16 %v3410_v46  ;;  %3473 = vset.pattern.permute.xlu2 %v3820_v9  ;;  %3795 = vset.pattern.permute.xlu1 %v3820_v9 }
 0x160   : > { %1621 = vperm.xlu2 %3473, %v306_v18  }
 0x161   : > { %1338 = vmatpush.msra.mxu3 %v3411_v53 }
 0x163   : > { %v3405_v48 = vpop.permute.xlu0 %3404  ;;  %1339 = vmatpush.msra.mxu3 %v3402_v55  ;;  %v4309_v14 = vpop.permute.xlu2 %3459 }
 0x164   : > { %v3407_v24 = vunpack.i.h.bf16 %v3405_v48  ;;  %v3406_v49 = vunpack.i.l.bf16 %v3405_v48  ;;  %v3462_v19 = vunpack.i.h.bf16 %v4309_v14  ;;  %v3461_v4 = vunpack.i.l.bf16 %v4309_v14 }
 0x165   : > { %1340 = vmatpush.msra.mxu3 %v3387_v7 }
 0x166   : > { %v3425_v11 = vpop.permute.xlu1 %3424  ;;  %v1247_v62 = vsel %vm1240_vm11, %v3406_v49, %v3412_v26  ;;  %v1248_v13 = vsel %vm1240_vm11, %v3412_v26, %v3407_v24  ;;  %v1249_v22 = vsel %vm1240_vm11, %v3407_v24, %v3411_v53  ;;  %3068 = vmatmul.msk.f32.vlgmr.msra.gmra.mxu3 %vm405_vm10, %v3064_v61  ;;  %v1515_v46 = vsel %vm1510_vm13, %v3462_v19, %v3446_v56 }
 0x167   : > { %1473 = vmatpush.msrb.mxu3 %v3417_v44  ;;  %1278 = vmatpush.msra.mxu0 %v1247_v62  ;;  %v3427_v5 = vunpack.i.h.bf16 %v3425_v11  ;;  %v3426_v6 = vunpack.i.l.bf16 %v3425_v11  ;;  %v1516_v53 = vsel %vm1510_vm13, %v3446_v56, %v3447_v28 }
 0x168   : > { %1298 = vmatpush.msra.mxu1 %v1248_v13  ;;  %1318 = vmatpush.msra.mxu2 %v1249_v22 }
 0x169   : > { %1279 = vmatpush.msra.mxu0 %v1244_v54  ;;  %v1378_v42 = vsel %vm1375_vm12, %v3426_v6, %v3427_v5 }
 0x16a   : > { %1299 = vmatpush.msra.mxu1 %v1245_v52  ;;  %1319 = vmatpush.msra.mxu2 %v1246_v3 }
 0x16b   : > { %v3420_v1 = vpop.permute.xlu0 %3419  ;;  %1280 = vmatpush.msra.mxu0 %v1241_v39 }
 0x16c   : > { %1300 = vmatpush.msra.mxu1 %v1242_v41  ;;  %v3422_v8 = vunpack.i.h.bf16 %v3420_v1  ;;  %v3421_v57 = vunpack.i.l.bf16 %v3420_v1  ;;  %1320 = vmatpush.msra.mxu2 %v1243_v27 }
 0x16d   : > { %3065 = vmatmul.msk.f32.vlgmr.msra.gmra.mxu0 %vm405_vm10, %v3064_v61  ;;  %3066 = vmatmul.msk.f32.vlgmr.msra.gmra.mxu1 %vm405_vm10, %v3064_v61 }
 0x16e   : > { %3067 = vmatmul.msk.f32.vlgmr.msra.gmra.mxu2 %vm405_vm10, %v3064_v61  ;;  %1433 = vmatpush.msrb.mxu1 %v1383_v0  ;;  %v3440_v16 = vpop.permute.xlu1 %3439  ;;  %v1380_v31 = vsel %vm1375_vm12, %v3432_v30, %v3421_v57  ;;  %v1381_v36 = vsel %vm1375_vm12, %v3421_v57, %v3422_v8 }
 0x16f   : > { %1453 = vmatpush.msrb.mxu2 %v1384_v10  ;;  %v3442_v17 = vunpack.i.h.bf16 %v3440_v16  ;;  %v3441_v33 = vunpack.i.l.bf16 %v3440_v16  ;;  %1474 = vmatpush.msrb.mxu3 %v3422_v8 }
 0x170   : > { %1434 = vmatpush.msrb.mxu1 %v1380_v31 }
 0x171   : > { %1454 = vmatpush.msrb.mxu2 %v1381_v36  ;;  %1475 = vmatpush.msrb.mxu3 %v3427_v5  ;;  %v1382_v15 = vsel %vm1375_vm12, %v3442_v17, %v3431_v63  ;;  %v1377_v25 = vsel %vm1375_vm12, %v3441_v33, %v3426_v6 }
 0x172   : > { %1413 = vmatpush.msrb.mxu0 %v1382_v15  ;;  %1435 = vmatpush.msrb.mxu1 %v1377_v25 }
 0x173   : > { %1455 = vmatpush.msrb.mxu2 %v1378_v42  ;;  %v3435_v34 = vpop.permute.xlu0 %3434  ;;  %3073 = vmatmul.msk.f32.vlgmr.msrb.gmra.mxu3 %vm405_vm10, %v3069_v12 }
 0x174   : > { %v3437_v20 = vunpack.i.h.bf16 %v3435_v34  ;;  %v3436_v21 = vunpack.i.l.bf16 %v3435_v34 }
 0x175   : > { %3071 = vmatmul.msk.f32.vlgmr.msrb.gmra.mxu1 %vm405_vm10, %v3069_v12 }
 0x176   : > { %3072 = vmatmul.msk.f32.vlgmr.msrb.gmra.mxu2 %vm405_vm10, %v3069_v12  ;;  %v3455_v23 = vpop.permute.xlu1 %3454  ;;  %1608 = vmatpush.msra.mxu3 %v3437_v20  ;;  %v1518_v38 = vsel %vm1510_vm13, %v3461_v4, %v3436_v21  ;;  %v1519_v40 = vsel %vm1510_vm13, %v3436_v21, %v3437_v20 }
 0x177   : > { %v3457_v47 = vunpack.i.h.bf16 %v3455_v23  ;;  %v3456_v43 = vunpack.i.l.bf16 %v3455_v23  ;;  %1568 = vmatpush.msra.mxu1 %v1518_v38  ;;  %1588 = vmatpush.msra.mxu2 %v1519_v40 }
 0x178   : > { %1609 = vmatpush.msra.mxu3 %v3447_v28 }
 0x179   : > { %1569 = vmatpush.msra.mxu1 %v1515_v46  ;;  %1589 = vmatpush.msra.mxu2 %v1516_v53  ;;  %v1379_v55 = vsel %vm1375_vm12, %v3456_v43, %v3432_v30  ;;  %v1376_v45 = vsel %vm1375_vm12, %v3457_v47, %v3441_v33 }
 0x17a   : > { %1414 = vmatpush.msrb.mxu0 %v1379_v55 }
 0x17b   : > { %v3450_v44 = vpop.permute.xlu0 %3449 }
 0x17c   : > { %v3452_v7 = vunpack.i.h.bf16 %v3450_v44  ;;  %v3451_v48 = vunpack.i.l.bf16 %v3450_v44  ;;  %1415 = vmatpush.msrb.mxu0 %v1376_v45 }
 0x17d   : > { %3070 = vmatmul.msk.f32.vlgmr.msrb.gmra.mxu0 %vm405_vm10, %v3069_v12 }
 0x17e   : > { %1610 = vmatpush.msra.mxu3 %v3452_v7  ;;  %v1513_v26 = vsel %vm1510_vm13, %v3451_v48, %v3452_v7  ;;  %v3470_v24 = vpop.permute.xlu1 %3469 }
 0x17f   : > { %1590 = vmatpush.msra.mxu2 %v1513_v26  ;;  %3078 = vmatmul.msk.f32.vlgmr.msra.gmra.mxu3 %vm405_vm10, %v3074_v51  ;;  %v3471_v29 = vunpack.i.l.bf16 %v3470_v24  ;;  %v3472_v11 = vunpack.i.h.bf16 %v3470_v24 }
 0x180   : > { %3077 = vmatmul.msk.f32.vlgmr.msra.gmra.mxu2 %vm405_vm10, %v3074_v51 }
 0x181   : > { %v1514_v62 = vsel %vm1510_vm13, %v3471_v29, %v3462_v19 }
 0x183   : > { %v3465_v49 = vpop.permute.xlu0 %3464 }
 0x184   : > { %v3467_v35 = vunpack.i.h.bf16 %v3465_v49  ;;  %v3466_v60 = vunpack.i.l.bf16 %v3465_v49 }
 0x186   : > { %v1517_v61 = vsel %vm1510_vm13, %v3467_v35, %v3461_v4  ;;  %v1512_v58 = vsel %vm1510_vm13, %v3466_v60, %v3451_v48  ;;  %v1511_v13 = vsel %vm1510_vm13, %v3472_v11, %v3466_v60 }
 0x187   : > { %1548 = vmatpush.msra.mxu0 %v1517_v61  ;;  %1570 = vmatpush.msra.mxu1 %v1512_v58 }
 0x188   : > { %3076 = vmatmul.msk.f32.vlgmr.msra.gmra.mxu1 %vm405_vm10, %v3074_v51 }
 0x189   : > { %1549 = vmatpush.msra.mxu0 %v1514_v62 }
 0x18b   : > { %1550 = vmatpush.msra.mxu0 %v1511_v13 }
 0x18c   : > { %3075 = vmatmul.msk.f32.vlgmr.msra.gmra.mxu0 %vm405_vm10, %v3074_v51 }
 0x190   : > { %v426_v63 = vpop.f32.mrf.mxu0 }
 0x19a   : > { %v446_v54 = vpop.f32.mrf.mxu1 }
 0x19d   : > { %v555_v5 = vpop.f32.mrf.mxu0 }
 0x19e   : > { %v556_v18 = vadd.f32 %v555_v5, %v426_v63 }
 0x1a0   : > { %v486_v22 = vpop.f32.mrf.mxu3 }
 0x1a2   : > { %v575_v3 = vpop.f32.mrf.mxu1 }
 0x1a3   : > { %v466_v50 = vpop.f32.mrf.mxu2  ;;  %v576_v34 = vadd.f32 %v575_v3, %v446_v54 }
 0x1a7   : > { %v686_v30 = vpop.f32.mrf.mxu0 }
 0x1a8   : > { %v615_v52 = vpop.f32.mrf.mxu3  ;;  %v749_v23 = vadd.f32 %v686_v30, %v556_v18 }
 0x1a9   : > { %v616_v17 = vadd.f32 %v615_v52, %v486_v22 }
 0x1ab   : > { %v595_v59 = vpop.f32.mrf.mxu2 }
 0x1ac   : > { %v596_v42 = vadd.f32 %v595_v59, %v466_v50  ;;  %v310_v50 = vld [vmem:[%s4988_s7] sm:$0xf] }
 0x1b1   : > { %v706_v6 = vpop.f32.mrf.mxu1 }
 0x1b2   : > { %v750_v20 = vadd.f32 %v706_v6, %v576_v34 }
 0x1b7   : > { %v746_v39 = vpop.f32.mrf.mxu3 }
 0x1b8   : > { %v726_v41 = vpop.f32.mrf.mxu2  ;;  %v752_v9 = vadd.f32 %v746_v39, %v616_v17 }
 0x1b9   : > { %v751_v25 = vadd.f32 %v726_v41, %v596_v42  ;;  %v1645_v41 = vperm.slane %v310_v50, 3 }
 0x1ba   : > { %v1622_v61 = vpop.permute.xlu2 %1621 }
 0x1c1   : > { %v888_v8 = vpop.f32.mrf.mxu1  ;;  %v868_v10 = vpop.f32.mrf.mxu0 }
 0x1c2   : > { %v932_v46 = vadd.f32 %v888_v8, %v750_v20  ;;  %v931_v55 = vadd.f32 %v868_v10, %v749_v23 }
 0x1c3   : > { %v928_v1 = vpop.f32.mrf.mxu3  ;;  %v908_v27 = vpop.f32.mrf.mxu2 }
 0x1c4   : > { %v934_v28 = vadd.f32 %v928_v1, %v752_v9  ;;  %v933_v19 = vadd.f32 %v908_v27, %v751_v25  ;;  %v1644_v27 = vperm.slane %v310_v50, 2  ;;  %v4346_v25 = vld [vmem:[#allocation2] sm:$0xff] }
 0x1c9   : > { %v1012_v37 = vpop.f32.mrf.mxu0 }
 0x1ca   : > { %v1075_v49 = vadd.f32 %v1012_v37, %v931_v55 }
 0x1d0   : > { %v1631_v54 = vpop.permute.xlu0 %1630 }
 0x1d1   : > { %v1032_v16 = vpop.f32.mrf.mxu1 }
 0x1d2   : > { %v1076_v44 = vadd.f32 %v1032_v16, %v932_v46 }
 0x1d8   : > { %v1072_v57 = vpop.f32.mrf.mxu3 }
 0x1d9   : > { %v1052_v0 = vpop.f32.mrf.mxu2  ;;  %v1147_v14 = vpop.f32.mrf.mxu0  ;;  %v1078_v4 = vadd.f32 %v1072_v57, %v934_v28 }
 0x1da   : > { %v1167_v33 = vpop.f32.mrf.mxu1  ;;  %v1077_v38 = vadd.f32 %v1052_v0, %v933_v19  ;;  %v1210_v62 = vadd.f32 %v1147_v14, %v1075_v49  ;;  %v1643_v0 = vperm.slane %v310_v50, 1 }
 0x1db   : > { %v1211_v48 = vadd.f32 %v1167_v33, %v1076_v44 }
 0x1e0   : > { %v1207_v31 = vpop.f32.mrf.mxu3 }
 0x1e1   : > { %v1187_v36 = vpop.f32.mrf.mxu2  ;;  %v1213_v47 = vadd.f32 %v1207_v31, %v1078_v4 }
 0x1e2   : > { %v1212_v45 = vadd.f32 %v1187_v36, %v1077_v38 }
 0x1e9   : > { %v1342_v12 = vpop.f32.mrf.mxu3 }
 0x1ea   : > { %v1302_v56 = vpop.f32.mrf.mxu1  ;;  %v1282_v21 = vpop.f32.mrf.mxu0  ;;  %v1348_v7 = vadd.f32 %v1342_v12, %v1213_v47  ;;  %v1642_v12 = vperm.slane %v310_v50, 0 }
 0x1eb   : > { %v1346_v29 = vadd.f32 %v1302_v56, %v1211_v48  ;;  %v1345_v63 = vadd.f32 %v1282_v21, %v1210_v62 }
 0x1f1   : > { %v1322_v15 = vpop.f32.mrf.mxu2 }
 0x1f2   : > { %v1437_v53 = vpop.f32.mrf.mxu1  ;;  %v1347_v51 = vadd.f32 %v1322_v15, %v1212_v45 }
 0x1f3   : > { %v1481_v13 = vadd.f32 %v1437_v53, %v1346_v29 }
 0x1f6   : > { %v1477_v40 = vpop.f32.mrf.mxu3 }
 0x1f7   : > { %v1483_v26 = vadd.f32 %v1477_v40, %v1348_v7 }
 0x1f9   : > { %v1457_v43 = vpop.f32.mrf.mxu2 }
 0x1fa   : > { %v1417_v24 = vpop.f32.mrf.mxu0  ;;  %v1482_v35 = vadd.f32 %v1457_v43, %v1347_v51 }
 0x1fb   : > { %v1480_v6 = vadd.f32 %v1417_v24, %v1345_v63 }
 0x202   : > { %v1612_v60 = vpop.f32.mrf.mxu3 }
 0x203   : > { %v1618_v58 = vadd.f32 %v1612_v60, %v1483_v26  ;;  %v1592_v11 = vpop.f32.mrf.mxu2  ;;  %v3212_v60 = vunpack.i.h.bf16 %v3953_v32 }
 0x204   : > { %v1617_v22 = vadd.f32 %v1592_v11, %v1482_v35 }
 0x205   : > { %v1627_v52 = vmul.f32 %v1622_v61, %v1618_v58  ;;  %v1572_v59 = vpop.f32.mrf.mxu1 }
 0x206   : > { %v1626_v3 = vmul.f32 %v1622_v61, %v1617_v22  ;;  %v1616_v39 = vadd.f32 %v1572_v59, %v1481_v13 }
 0x207   : > { %v1636_v5 = vadd.f32 %v1631_v54, %v1627_v52 }
 0x208   : > { %v1625_v1 = vmul.f32 %v1622_v61, %v1616_v39  ;;  %v1635_v30 = vadd.f32 %v1631_v54, %v1626_v3 }
 0x209   : > { %v1640_v8 = vmax.f32 %v1636_v5, 0.0  ;;  %v1552_v57 = vpop.f32.mrf.mxu0 }
 0x20a   : > { %v1634_v10 = vadd.f32 %v1631_v54, %v1625_v1  ;;  %v1639_v16 = vmax.f32 %v1635_v30, 0.0  ;;  %v1615_v31 = vadd.f32 %v1552_v57, %v1480_v6 }
 0x20b   : > { %v1653_v36 = vmul.f32 %v1645_v41, %v1640_v8 }
 0x20c   : > { %v1638_v37 = vmax.f32 %v1634_v10, 0.0  ;;  %v1652_v17 = vmul.f32 %v1644_v27, %v1639_v16  ;;  %v1624_v33 = vmul.f32 %v1622_v61, %v1615_v31 }
 0x20d   : > { %1657 = vst.msk [vmem:[#allocation2 + $0x20] sm:$0xff] %vm314_vm1, %v1653_v36 }
 0x20e   : > { %v1651_v42 = vmul.f32 %v1643_v0, %v1638_v37  ;;  %v1633_v9 = vadd.f32 %v1631_v54, %v1624_v33  ;;  %v3525_v19 = vpack.i.bf16 %v4346_v25, %v1652_v17 }
 0x210   : > { %v1637_v14 = vmax.f32 %v1633_v9, 0.0  ;;  %v3530_v4 = vpack.i.bf16 %v1652_v17, %v1651_v42 }
 0x212   : > { %v1650_v15 = vmul.f32 %v1642_v12, %v1637_v14 }
 0x214   : > { %v3505_v28 = vpack.i.bf16 %v1650_v15, %v4346_v25  ;;  %v4349_v56 = vpack.i.bf16 %v1651_v42, %v1650_v15  ;;  %v4355_v34 = vld [vmem:[#allocation2 + $0x20] sm:$0xff] }
 0x215   : > { %v3520_v18 = vpack.i.bf16 %v4346_v25, %v4355_v34  ;;  %v4371_v20 = vpack.i.bf16 %v4355_v34, %v1652_v17 }
 0x216   : > { %3506 = vrot.lane.b32.xlu2 %v3505_v28, %s3815_s17  ;;  %3486 = vrot.lane.b32.xlu0 %v3505_v28, %s3811_s13 }
 0x217   : > { %3476 = vrot.lane.b32.xlu1 %v4349_v56, %s3810_s12 }
 0x21e   : > { %3521 = vrot.lane.b32.xlu2 %v3520_v18, %s3809_s11  ;;  %3491 = vrot.lane.b32.xlu0 %v3505_v28, %s3812_s14 }
 0x21f   : > { %3481 = vrot.lane.b32.xlu1 %v3505_v28, %s3809_s11 }
 0x226   : > { %3526 = vrot.lane.b32.xlu2 %v3525_v19, %s3810_s12  ;;  %3496 = vrot.lane.b32.xlu0 %v3505_v28, %s3813_s15 }
 0x227   : > { %2107 = vrot.lane.b32.xlu1 %v1650_v15, %s3809_s11 }
 0x22e   : > { %3531 = vrot.lane.b32.xlu2 %v3530_v4, %s3809_s11  ;;  %3501 = vrot.lane.b32.xlu0 %v4349_v56, %s3810_s12 }
 0x22f   : > { %3536 = vrot.lane.b32.xlu1 %v3530_v4, %s3811_s13 }
 0x236   : > { %3571 = vrot.lane.b32.xlu2 %v4371_v20, %s3816_s18  ;;  %2266 = vrot.lane.b32.xlu0 %v1650_v15, %s3814_s16 }
 0x237   : > { %3541 = vrot.lane.b32.xlu1 %v3530_v4, %s3812_s14 }
 0x23e   : > { %3576 = vrot.lane.b32.xlu2 %v4371_v20, %s3817_s19  ;;  %3511 = vrot.lane.b32.xlu0 %v4349_v56, %s3816_s18 }
 0x23f   : > { %3546 = vrot.lane.b32.xlu1 %v3530_v4, %s3813_s15 }
 0x246   : > { %3581 = vrot.lane.b32.xlu2 %v4371_v20, %s3818_s20  ;;  %3516 = vrot.lane.b32.xlu0 %v4349_v56, %s3817_s19 }
 0x247   : > { %3551 = vrot.lane.b32.xlu1 %v3530_v4, %s3809_s11 }
 0x24e   : > { %3556 = vrot.lane.b32.xlu0 %v4371_v20, %s3810_s12 }
 0x24f   : > { %3566 = vrot.lane.b32.xlu1 %v3530_v4, %s3814_s16 }
 0x256   : > { %3561 = vrot.lane.b32.xlu0 %v3530_v4, %s3815_s17 }
 0x270   : > { %v4391_v21 = vpop.permute.xlu2 %3506 }
 0x278   : > { %v4393_v23 = vpop.permute.xlu2 %3521 }
 0x280   : > { %v4395_v38 = vpop.permute.xlu2 %3526 }
 0x281   : > { %v3529_v52 = vunpack.i.h.bf16 %v4395_v38 }
 0x288   : > { %v4397_v40 = vpop.permute.xlu0 %3486  ;;  %v4401_v43 = vpop.permute.xlu2 %3531 }
 0x289   : > { %v4399_v47 = vpop.permute.xlu1 %3476  ;;  %v3533_v55 = vunpack.i.l.bf16 %v4401_v43  ;;  %v3489_v13 = vunpack.i.h.bf16 %v4397_v40 }
 0x28a   : > { %v3479_v29 = vunpack.i.h.bf16 %v4399_v47  ;;  %v3478_v35 = vunpack.i.l.bf16 %v4399_v47 }
 0x28c   : > { %v1674_v61 = vsel %vm340_vm3, %v3212_v60, %v3478_v35  ;;  %v1675_v58 = vsel %vm340_vm3, %v3478_v35, %v3479_v29  ;;  %v3528_v60 = vunpack.i.l.bf16 %v4395_v38 }
 0x28d   : > { %v3590_v50 = vpack.i.bf16 %v1675_v58, %v1674_v61  ;;  %v3523_v58 = vunpack.i.l.bf16 %v4393_v23 }
 0x290   : > { %v4403_v46 = vpop.permute.xlu0 %3491  ;;  %v4444_v5 = vpop.permute.xlu2 %3571 }
 0x291   : > { %v3482_v53 = vpop.permute.xlu1 %3481  ;;  %v3494_v3 = vunpack.i.h.bf16 %v4403_v46  ;;  %v3573_v8 = vunpack.i.l.bf16 %v4444_v5 }
 0x292   : > { %v3484_v44 = vunpack.i.h.bf16 %v3482_v53  ;;  %v3483_v45 = vunpack.i.l.bf16 %v3482_v53 }
 0x294   : > { %v1685_v7 = vsel %vm352_vm4, %v3483_v45, %v3484_v44  ;;  %v1686_v48 = vsel %vm352_vm4, %v3484_v44, %v3533_v55 }
 0x295   : > { %v3595_v51 = vpack.i.bf16 %v1686_v48, %v1685_v7 }
 0x297   : > { %3596 = vrot.lane.b32.xlu1 %v3595_v51, %s3811_s13 }
 0x298   : > { %v4411_v26 = vpop.permute.xlu0 %3496  ;;  %v4481_v33 = vpop.permute.xlu2 %3576 }
 0x299   : > { %v2108_v24 = vpop.permute.xlu1 %2107  ;;  %v3499_v10 = vunpack.i.h.bf16 %v4411_v26  ;;  %v3578_v9 = vunpack.i.l.bf16 %v4481_v33 }
 0x29a   : > { %v3585_v49 = vpack.i.bf16 %v2108_v24, %v4355_v34 }
 0x29c   : > { %3586 = vrot.lane.b32.xlu2 %v3585_v49, %s3814_s16 }
 0x29f   : > { %3606 = vrot.lane.b32.xlu1 %v3595_v51, %s3812_s14 }
 0x2a0   : > { %v3502_v11 = vpop.permute.xlu0 %3501 }
 0x2a1   : > { %v4423_v62 = vpop.permute.xlu1 %3536  ;;  %v3503_v54 = vunpack.i.l.bf16 %v3502_v11  ;;  %v3504_v27 = vunpack.i.h.bf16 %v3502_v11  ;;  %v1676_v11 = vsel %vm340_vm3, %v3479_v29, %v3528_v60 }
 0x2a2   : > { %v3538_v22 = vunpack.i.l.bf16 %v4423_v62 }
 0x2a3   : > { %v2101_v41 = vsel %vm340_vm3, %v3529_v52, %v3503_v54  ;;  %v2102_v16 = vsel %vm340_vm3, %v3503_v54, %v3504_v27 }
 0x2a4   : > { %3591 = vrot.lane.b32.xlu2 %v3590_v50, %s3811_s13  ;;  %v4433_v32 = vsel %vm383_vm2, %v3489_v13, %v3538_v22  ;;  %v3620_v1 = vpack.i.bf16 %v2101_v41, %v4355_v34  ;;  %v3630_v17 = vpack.i.bf16 %v4346_v25, %v2102_v16  ;;  %v3524_v34 = vunpack.i.h.bf16 %v4393_v23 }
 0x2a5   : > { %v3640_v41 = vpack.i.bf16 %v3528_v60, %v1676_v11 }
 0x2a6   : > { %v2115_v53 = vsel %vm352_vm4, %v3524_v34, %v2108_v24 }
 0x2a7   : > { %3616 = vrot.lane.b32.xlu1 %v3595_v51, %s3813_s15  ;;  %v3534_v51 = vunpack.i.h.bf16 %v4401_v43 }
 0x2a8   : > { %v4437_v59 = vpop.permute.xlu0 %2266 }
 0x2a9   : > { %v4439_v63 = vpop.permute.xlu1 %3541 }
 0x2aa   : > { %v3543_v39 = vunpack.i.l.bf16 %v4439_v63 }
 0x2ac   : > { %3601 = vrot.lane.b32.xlu2 %v3590_v50, %s3812_s14  ;;  %v4452_v6 = vsel %vm513_vm5, %v3494_v3, %v3543_v39 }
 0x2af   : > { %3621 = vrot.lane.b32.xlu1 %v3620_v1, %s3815_s17 }
 0x2b0   : > { %v4456_v30 = vpop.permute.xlu0 %3511 }
 0x2b1   : > { %v3514_v57 = vunpack.i.h.bf16 %v4456_v30  ;;  %v4460_v0 = vpop.permute.xlu1 %3546 }
 0x2b2   : > { %v3548_v31 = vunpack.i.l.bf16 %v4460_v0 }
 0x2b3   : > { %v4470_v36 = vsel %vm1105_vm8, %v3514_v57, %v3573_v8 }
 0x2b4   : > { %3611 = vrot.lane.b32.xlu2 %v3590_v50, %s3813_s15  ;;  %v4478_v37 = vsel %vm644_vm6, %v3499_v10, %v3548_v31  ;;  %v1687_v50 = vsel %vm352_vm4, %v3533_v55, %v3534_v51  ;;  %v4530_v55 = vpop.permute.xlu2 %3581 }
 0x2b5   : > { %v3645_v38 = vpack.i.bf16 %v3534_v51, %v1687_v50 }
 0x2b7   : > { %3631 = vrot.lane.b32.xlu1 %v3630_v17, %s3814_s16 }
 0x2b8   : > { %v4484_v42 = vpop.permute.xlu0 %3516 }
 0x2b9   : > { %v3519_v12 = vunpack.i.h.bf16 %v4484_v42  ;;  %v3552_v14 = vpop.permute.xlu1 %3551 }
 0x2ba   : > { %v3553_v15 = vunpack.i.l.bf16 %v3552_v14  ;;  %v3554_v35 = vunpack.i.h.bf16 %v3552_v14 }
 0x2bb   : > { %v4493_v28 = vsel %vm1240_vm11, %v3519_v12, %v3578_v9 }
 0x2bc   : > { %v2116_v25 = vsel %vm352_vm4, %v2108_v24, %v3553_v15  ;;  %v2117_v52 = vsel %vm352_vm4, %v3553_v15, %v3554_v35 }
 0x2bd   : > { %2143 = vrot.lane.b32.xlu0 %v2116_v25, %s3815_s17  ;;  %v3625_v7 = vpack.i.bf16 %v3503_v54, %v2116_v25  ;;  %v2118_v54 = vsel %vm352_vm4, %v3554_v35, %v3523_v58  ;;  %v3670_v47 = vpack.i.bf16 %v2117_v52, %v2102_v16 }
 0x2be   : > { %v3685_v1 = vpack.i.bf16 %v2118_v54, %v2117_v52  ;;  %v3675_v23 = vpack.i.bf16 %v3523_v58, %v2118_v54 }
 0x2c0   : > { %v3557_v18 = vpop.permute.xlu0 %3556 }
 0x2c1   : > { %v3559_v19 = vunpack.i.h.bf16 %v3557_v18  ;;  %v3558_v4 = vunpack.i.l.bf16 %v3557_v18 }
 0x2c3   : > { %v2103_v44 = vsel %vm340_vm3, %v3504_v27, %v3558_v4  ;;  %v2104_v45 = vsel %vm340_vm3, %v3558_v4, %v3559_v19  ;;  %v3635_v48 = vpack.i.bf16 %v2115_v53, %v3559_v19  ;;  %v3715_v27 = vpack.i.bf16 %v2117_v52, %v2116_v25 }
 0x2c4   : > { %v3680_v49 = vpack.i.bf16 %v2104_v45, %v2103_v44  ;;  %v3775_v61 = vpack.i.bf16 %v3559_v19, %v2104_v45  ;;  %v3785_v24 = vpack.i.bf16 %v2103_v44, %v2102_v16  ;;  %v3690_v43 = vpack.i.bf16 %v2103_v44, %v3523_v58  ;;  %v4541_v16 = vpop.permute.xlu1 %3566  ;;  %v4563_v45 = vld [vmem:[%s4985_s4 + $0x8] sm:$0xff]  ;;  %v4591_v58 = vld [vmem:[%s4985_s4] sm:$0xff] }
 0x2c5   : > { %3626 = vrot.lane.b32.xlu0 %v3625_v7, %s3814_s16  ;;  %3636 = vrot.lane.b32.xlu2 %v3635_v48, %s3815_s17  ;;  %v3488_v19 = vunpack.i.l.bf16 %v4397_v40 }
 0x2c6   : > { %3681 = vrot.lane.b32.xlu1 %v3680_v49, %s3815_s17 }
 0x2c7   : > { %v1715_v7 = vsel %vm383_vm2, %v3488_v19, %v3489_v13 }
 0x2cd   : > { %3641 = vrot.lane.b32.xlu0 %v3640_v41, %s3811_s13  ;;  %3646 = vrot.lane.b32.xlu2 %v3645_v38, %s3811_s13 }
 0x2ce   : > { %3686 = vrot.lane.b32.xlu1 %v3685_v1, %s3814_s16 }
 0x2d5   : > { %3651 = vrot.lane.b32.xlu0 %v3640_v41, %s3812_s14  ;;  %3656 = vrot.lane.b32.xlu2 %v3645_v38, %s3812_s14 }
 0x2d6   : > { %3711 = vrot.lane.b32.xlu1 %v3775_v61, %s3816_s18 }
 0x2dd   : > { %3661 = vrot.lane.b32.xlu0 %v3640_v41, %s3813_s15  ;;  %3666 = vrot.lane.b32.xlu2 %v3645_v38, %s3813_s15  ;;  %v308_v38 = vld [vmem:[%s4986_s5] sm:$0xff] }
 0x2de   : > { %3721 = vrot.lane.b32.xlu1 %v3785_v24, %s3816_s18 }
 0x2e5   : > { %3676 = vrot.lane.b32.xlu0 %v3675_v23, %s3815_s17  ;;  %3671 = vrot.lane.b32.xlu2 %v3670_v47, %s3815_s17  ;;  %s305_s17 = scalar_lea.vmem %s4989_s8, %s3125_s29 }
 0x2e6   : > { %3731 = vrot.lane.b32.xlu1 %v3775_v61, %s3817_s19 }
 0x2ed   : > { %3696 = vrot.lane.b32.xlu0 %v3775_v61, %s3814_s16  ;;  %3691 = vrot.lane.b32.xlu2 %v3690_v43, %s3814_s16 }
 0x2ee   : > { %3741 = vrot.lane.b32.xlu1 %v3785_v24, %s3817_s19 }
 0x2f5   : > { %3701 = vrot.lane.b32.xlu0 %v4349_v56, %s3818_s20  ;;  %3706 = vrot.lane.b32.xlu2 %v3675_v23, %s3816_s18 }
 0x2f6   : > { %3751 = vrot.lane.b32.xlu1 %v3775_v61, %s3818_s20  ;;  %v4536_v29 = vpop.permute.xlu2 %3586 }
 0x2fd   : > { %3716 = vrot.lane.b32.xlu0 %v3715_v27, %s3816_s18  ;;  %3726 = vrot.lane.b32.xlu2 %v3675_v23, %s3817_s19 }
 0x2fe   : > { %3761 = vrot.lane.b32.xlu1 %v3785_v24, %s3818_s20  ;;  %v4543_v17 = vpop.permute.xlu2 %3591 }
 0x2ff   : > { %v3594_v15 = vunpack.i.h.bf16 %v4543_v17  ;;  %v3593_v25 = vunpack.i.l.bf16 %v4543_v17 }
 0x301   : > { %v1718_v44 = vsel %vm383_vm2, %v3593_v25, %v3594_v15 }
 0x305   : > { %3736 = vrot.lane.b32.xlu0 %v3715_v27, %s3817_s19  ;;  %3746 = vrot.lane.b32.xlu2 %v3675_v23, %s3818_s20 }
 0x306   : > { %3776 = vrot.lane.b32.xlu1 %v3775_v61, %s3819_s21  ;;  %v4552_v53 = vpop.permute.xlu2 %3601  ;;  %v3493_v61 = vunpack.i.l.bf16 %v4403_v46  ;;  %v3498_v46 = vunpack.i.l.bf16 %v4411_v26 }
 0x307   : > { %v3604_v51 = vunpack.i.h.bf16 %v4552_v53  ;;  %v3603_v49 = vunpack.i.l.bf16 %v4552_v53 }
 0x308   : > { %v1843_v11 = vsel %vm513_vm5, %v3493_v61, %v3494_v3  ;;  %v1973_v47 = vsel %vm644_vm6, %v3498_v46, %v3499_v10 }
 0x309   : > { %v3597_v14 = vpop.permute.xlu1 %3596  ;;  %v1846_v13 = vsel %vm513_vm5, %v3603_v49, %v3604_v51 }
 0x30a   : > { %v3599_v34 = vunpack.i.h.bf16 %v3597_v14  ;;  %v3598_v18 = vunpack.i.l.bf16 %v3597_v14 }
 0x30c   : > { %v1721_v4 = vsel %vm383_vm2, %v3598_v18, %v3599_v34 }
 0x30d   : > { %1752 = vmatpush.msrb.mxu0 %v1721_v4  ;;  %3756 = vrot.lane.b32.xlu0 %v3715_v27, %s3818_s20 }
 0x30e   : > { %3766 = vrot.lane.b32.xlu2 %v3675_v23, %s3819_s21  ;;  %3786 = vrot.lane.b32.xlu1 %v3785_v24, %s3819_s21  ;;  %v4586_v24 = vpop.permute.xlu2 %3611 }
 0x30f   : > { %1753 = vmatpush.msrb.mxu0 %v1718_v44  ;;  %v3613_v54 = vunpack.i.l.bf16 %v4586_v24 }
 0x311   : > { %v4568_v48 = vpop.permute.xlu1 %3606  ;;  %1754 = vmatpush.msrb.mxu0 %v1715_v7 }
 0x312   : > { %v3609_v35 = vunpack.i.h.bf16 %v4568_v48  ;;  %v3608_v60 = vunpack.i.l.bf16 %v4568_v48  ;;  %3080 = vmatmul.msk.f32.vlgmr.msrb.gmra.mxu0 %vm405_vm10, %v4563_v45 }
 0x314   : > { %v1849_v40 = vsel %vm513_vm5, %v3608_v60, %v3609_v35 }
 0x315   : > { %3781 = vrot.lane.b32.xlu0 %v3715_v27, %s3819_s21  ;;  %1880 = vmatpush.msra.mxu0 %v1849_v40  ;;  %v4623_v27 = vpop.permute.xlu0 %3561  ;;  %v3539_v40 = vunpack.i.h.bf16 %v4423_v62 }
 0x316   : > { %3771 = vrot.lane.b32.xlu2 %v4371_v20, %s3819_s21  ;;  %v3614_v20 = vunpack.i.h.bf16 %v4586_v24 }
 0x317   : > { %1881 = vmatpush.msra.mxu0 %v1846_v13  ;;  %v1717_v17 = vsel %vm383_vm2, %v3538_v22, %v3539_v40 }
 0x318   : > { %v1976_v1 = vsel %vm644_vm6, %v3613_v54, %v3614_v20 }
 0x319   : > { %v4596_v50 = vpop.permute.xlu1 %3616  ;;  %1882 = vmatpush.msra.mxu0 %v1843_v11 }
 0x31a   : > { %v3619_v52 = vunpack.i.h.bf16 %v4596_v50  ;;  %v3618_v41 = vunpack.i.l.bf16 %v4596_v50  ;;  %3084 = vmatmul.msk.f32.vlgmr.msra.gmra.mxu0 %vm405_vm10, %v4591_v58 }
 0x31c   : > { %v1979_v3 = vsel %vm644_vm6, %v3618_v41, %v3619_v52 }
 0x31d   : > { %2943 = vperm.xlu0 %3474, %v308_v38   ;;  %2010 = vmatpush.msrb.mxu0 %v1979_v3 }
 0x31e   : > { %3791 = vrot.lane.b32.xlu2 %v4349_v56, %s3819_s21  ;;  %v4628_v56 = vld [vmem:[%s4985_s4 + $0x10] sm:$0xff] }
 0x31f   : > { %2011 = vmatpush.msrb.mxu0 %v1976_v1  ;;  %v4616_v23 = vpop.permute.xlu2 %3636 }
 0x320   : > { %v3639_v19 = vunpack.i.h.bf16 %v4616_v23 }
 0x321   : > { %2012 = vmatpush.msrb.mxu0 %v1973_v47  ;;  %v4621_v43 = vpop.permute.xlu1 %3621 }
 0x322   : > { %3089 = vmatmul.msk.f32.vlgmr.msrb.gmra.mxu0 %vm405_vm10, %v4628_v56  ;;  %v3624_v54 = vunpack.i.h.bf16 %v4621_v43 }
 0x327   : > { %v3647_v14 = vpop.permute.xlu2 %3646 }
 0x328   : > { %v3649_v25 = vunpack.i.h.bf16 %v3647_v14  ;;  %v3648_v18 = vunpack.i.l.bf16 %v3647_v14 }
 0x329   : > { %v4637_v7 = vpop.permute.xlu1 %3631 }
 0x32a   : > { %1812 = vmatpush.msrb.mxu3 %v3649_v25  ;;  %v1722_v26 = vsel %vm383_vm2, %v3599_v34, %v3648_v18  ;;  %v1723_v10 = vsel %vm383_vm2, %v3648_v18, %v3649_v25  ;;  %v3634_v48 = vunpack.i.h.bf16 %v4637_v7 }
 0x32b   : > { %1772 = vmatpush.msrb.mxu1 %v1722_v26  ;;  %1792 = vmatpush.msrb.mxu2 %v1723_v10  ;;  %v3509_v26 = vunpack.i.h.bf16 %v4391_v21  ;;  %v3508_v10 = vunpack.i.l.bf16 %v4391_v21 }
 0x32f   : > { %v4635_v4 = vpop.permute.xlu0 %2143  ;;  %v3657_v44 = vpop.permute.xlu2 %3656 }
 0x330   : > { %v2159_v49 = vsel %vm823_vm9, %v3639_v19, %v4635_v4  ;;  %v3659_v25 = vunpack.i.h.bf16 %v3657_v44  ;;  %v3658_v18 = vunpack.i.l.bf16 %v3657_v44  ;;  %v3589_v19 = vunpack.i.h.bf16 %v4536_v29 }
 0x331   : > { %2191 = vmatpush.msra.mxu0 %v2159_v49 }
 0x332   : > { %v1850_v62 = vsel %vm513_vm5, %v3609_v35, %v3658_v18  ;;  %v1851_v22 = vsel %vm513_vm5, %v3658_v18, %v3659_v25  ;;  %v3633_v35 = vunpack.i.l.bf16 %v4637_v7 }
 0x337   : > { %v4641_v60 = vpop.permute.xlu0 %3626  ;;  %v4643_v61 = vpop.permute.xlu2 %3666 }
 0x338   : > { %v4645_v34 = vpop.permute.xlu1 %3681  ;;  %v3629_v44 = vunpack.i.h.bf16 %v4641_v60  ;;  %v3669_v18 = vunpack.i.h.bf16 %v4643_v61 }
 0x33f   : > { %v3642_v13 = vpop.permute.xlu0 %3641  ;;  %v4648_v11 = vpop.permute.xlu2 %3671 }
 0x340   : > { %v3644_v41 = vunpack.i.h.bf16 %v3642_v13  ;;  %v3643_v38 = vunpack.i.l.bf16 %v3642_v13  ;;  %v3673_v46 = vunpack.i.l.bf16 %v4648_v11  ;;  %v4652_v3 = vpop.permute.xlu1 %3686  ;;  %v2151_v13 = vsel %vm823_vm9, %v3508_v10, %v3509_v26 }
 0x341   : > { %v3549_v10 = vunpack.i.h.bf16 %v4460_v0  ;;  %v4748_v0 = vld [vmem:[%s4985_s4 + $0x20] sm:$0xff] }
 0x342   : > { %1813 = vmatpush.msrb.mxu3 %v3644_v41  ;;  %v1719_v1 = vsel %vm383_vm2, %v3594_v15, %v3643_v38  ;;  %v1720_v47 = vsel %vm383_vm2, %v3643_v38, %v3644_v41  ;;  %v2155_v14 = vsel %vm823_vm9, %v3624_v54, %v3673_v46  ;;  %v3628_v15 = vunpack.i.l.bf16 %v4641_v60 }
 0x343   : > { %1773 = vmatpush.msrb.mxu1 %v1719_v1  ;;  %1793 = vmatpush.msrb.mxu2 %v1720_v47 }
 0x344   : > { %1814 = vmatpush.msrb.mxu3 %v3539_v40  ;;  %2192 = vmatpush.msra.mxu0 %v2155_v14  ;;  %v3544_v40 = vunpack.i.h.bf16 %v4439_v63  ;;  %v2302_v38 = vsel %vm967_vm7, %v3589_v19, %v3628_v15  ;;  %v3668_v14 = vunpack.i.l.bf16 %v4643_v61  ;;  %v4713_v61 = vld [vmem:[%s4985_s4 + $0x18] sm:$0xff] }
 0x345   : > { %1774 = vmatpush.msrb.mxu1 %v4433_v32  ;;  %1794 = vmatpush.msrb.mxu2 %v1717_v17 }
 0x346   : > { %3083 = vmatmul.msk.f32.vlgmr.msrb.gmra.mxu3 %vm405_vm10, %v4563_v45  ;;  %3081 = vmatmul.msk.f32.vlgmr.msrb.gmra.mxu1 %vm405_vm10, %v4563_v45  ;;  %v1845_v53 = vsel %vm513_vm5, %v3543_v39, %v3544_v40  ;;  %v1980_v63 = vsel %vm644_vm6, %v3619_v52, %v3668_v14  ;;  %v1981_v17 = vsel %vm644_vm6, %v3668_v14, %v3669_v18  ;;  %v3623_v14 = vunpack.i.l.bf16 %v4621_v43 }
 0x347   : > { %1940 = vmatpush.msra.mxu3 %v3659_v25  ;;  %3082 = vmatmul.msk.f32.vlgmr.msrb.gmra.mxu2 %vm405_vm10, %v4563_v45  ;;  %v3652_v32 = vpop.permute.xlu0 %3651  ;;  %v4680_v49 = vpop.permute.xlu2 %3691  ;;  %v2298_v25 = vsel %vm967_vm7, %v3629_v44, %v3633_v35  ;;  %v1975_v52 = vsel %vm644_vm6, %v3548_v31, %v3549_v10  ;;  %v3688_v31 = vunpack.i.l.bf16 %v4652_v3 }
 0x348   : > { %1900 = vmatpush.msra.mxu1 %v1850_v62  ;;  %1920 = vmatpush.msra.mxu2 %v1851_v22  ;;  %v3654_v54 = vunpack.i.h.bf16 %v3652_v32  ;;  %v3653_v41 = vunpack.i.l.bf16 %v3652_v32  ;;  %v4686_v45 = vpop.permute.xlu1 %3711  ;;  %v3674_v22 = vunpack.i.h.bf16 %v4648_v11  ;;  %v3563_v32 = vunpack.i.l.bf16 %v4623_v27 }
 0x349   : > { %2193 = vmatpush.msra.mxu0 %v2151_v13  ;;  %v2303_v21 = vsel %vm967_vm7, %v3628_v15, %v3688_v31 }
 0x34a   : > { %1941 = vmatpush.msra.mxu3 %v3654_v54  ;;  %v1847_v1 = vsel %vm513_vm5, %v3604_v51, %v3653_v41  ;;  %v1848_v47 = vsel %vm513_vm5, %v3653_v41, %v3654_v54  ;;  %v2294_v51 = vsel %vm967_vm7, %v3634_v48, %v4437_v59  ;;  %3094 = vmatmul.msk.f32.vlgmr.msra.gmra.mxu0 %vm405_vm10, %v4713_v61  ;;  %v3694_v48 = vunpack.i.h.bf16 %v4680_v49 }
 0x34b   : > { %2334 = vmatpush.msrb.mxu0 %v2302_v38  ;;  %1901 = vmatpush.msra.mxu1 %v1847_v1  ;;  %v2160_v24 = vsel %vm823_vm9, %v4635_v4, %v3674_v22  ;;  %v3684_v4 = vunpack.i.h.bf16 %v4645_v34  ;;  %v2152_v11 = vsel %vm823_vm9, %v3509_v26, %v3563_v32  ;;  %v3689_v26 = vunpack.i.h.bf16 %v4652_v3 }
 0x34c   : > { %1921 = vmatpush.msra.mxu2 %v1848_v47  ;;  %1942 = vmatpush.msra.mxu3 %v3544_v40  ;;  %v3683_v40 = vunpack.i.l.bf16 %v4645_v34  ;;  %v3564_v34 = vunpack.i.h.bf16 %v4623_v27  ;;  %v3568_v47 = vunpack.i.l.bf16 %v4541_v16  ;;  %v2299_v43 = vsel %vm967_vm7, %v3633_v35, %v3694_v48 }
 0x34d   : > { %2335 = vmatpush.msrb.mxu0 %v2298_v25  ;;  %1902 = vmatpush.msra.mxu1 %v4452_v6  ;;  %v3693_v25 = vunpack.i.l.bf16 %v4680_v49  ;;  %v3569_v35 = vunpack.i.h.bf16 %v4541_v16 }
 0x34e   : > { %1922 = vmatpush.msra.mxu2 %v1845_v53  ;;  %3087 = vmatmul.msk.f32.vlgmr.msra.gmra.mxu3 %vm405_vm10, %v4591_v58  ;;  %v2157_v27 = vsel %vm823_vm9, %v3683_v40, %v3684_v4  ;;  %v2153_v60 = vsel %vm823_vm9, %v3563_v32, %v3564_v34  ;;  %v2295_v3 = vsel %vm967_vm7, %v4437_v59, %v3568_v47 }
 0x34f   : > { %2336 = vmatpush.msrb.mxu0 %v2294_v51  ;;  %2070 = vmatpush.msrb.mxu3 %v3669_v18  ;;  %v3662_v39 = vpop.permute.xlu0 %3661  ;;  %v4720_v6 = vpop.permute.xlu2 %3706  ;;  %v2154_v18 = vsel %vm823_vm9, %v3564_v34, %v3623_v14  ;;  %v3588_v51 = vunpack.i.l.bf16 %v4536_v29  ;;  %v2305_v59 = vsel %vm967_vm7, %v3689_v26, %v3693_v25  ;;  %v3103_v34 = vld [vmem:[%s4985_s4 + $0x28] sm:$0xff] }
 0x350   : > { %3085 = vmatmul.msk.f32.vlgmr.msra.gmra.mxu1 %vm405_vm10, %v4591_v58  ;;  %3086 = vmatmul.msk.f32.vlgmr.msra.gmra.mxu2 %vm405_vm10, %v4591_v58  ;;  %v3664_v19 = vunpack.i.h.bf16 %v3662_v39  ;;  %v3663_v44 = vunpack.i.l.bf16 %v3662_v39  ;;  %v4726_v62 = vpop.permute.xlu1 %3721  ;;  %v3709_v39 = vunpack.i.h.bf16 %v4720_v6 }
 0x351   : > { %2030 = vmatpush.msrb.mxu1 %v1980_v63  ;;  %2050 = vmatpush.msrb.mxu2 %v1981_v17  ;;  %v2304_v63 = vsel %vm967_vm7, %v3688_v31, %v3689_v26 }
 0x352   : > { %2071 = vmatpush.msrb.mxu3 %v3664_v19  ;;  %v1977_v50 = vsel %vm644_vm6, %v3614_v20, %v3663_v44  ;;  %v1978_v58 = vsel %vm644_vm6, %v3663_v44, %v3664_v19  ;;  %3099 = vmatmul.msk.f32.vlgmr.msrb.gmra.mxu0 %vm405_vm10, %v4748_v0  ;;  %v3713_v19 = vunpack.i.l.bf16 %v4686_v45  ;;  %v2296_v44 = vsel %vm967_vm7, %v3568_v47, %v3569_v35 }
 0x353   : > { %2031 = vmatpush.msrb.mxu1 %v1977_v50  ;;  %2051 = vmatpush.msrb.mxu2 %v1978_v58  ;;  %v3574_v50 = vunpack.i.h.bf16 %v4444_v5 }
 0x354   : > { %2072 = vmatpush.msrb.mxu3 %v3549_v10  ;;  %v3708_v10 = vunpack.i.l.bf16 %v4720_v6 }
 0x355   : > { %2032 = vmatpush.msrb.mxu1 %v4478_v37  ;;  %2052 = vmatpush.msrb.mxu2 %v1975_v52  ;;  %v2156_v37 = vsel %vm823_vm9, %v3673_v46, %v3683_v40 }
 0x356   : > { %3092 = vmatmul.msk.f32.vlgmr.msrb.gmra.mxu3 %vm405_vm10, %v4628_v56  ;;  %v2439_v6 = vsel %vm1105_vm8, %v3708_v10, %v3709_v39 }
 0x357   : > { %2211 = vmatpush.msra.mxu1 %v2160_v24  ;;  %v3677_v20 = vpop.permute.xlu0 %3676  ;;  %v4762_v38 = vpop.permute.xlu2 %3726 }
 0x358   : > { %3090 = vmatmul.msk.f32.vlgmr.msrb.gmra.mxu1 %vm405_vm10, %v4628_v56  ;;  %3091 = vmatmul.msk.f32.vlgmr.msrb.gmra.mxu2 %vm405_vm10, %v4628_v56  ;;  %v3679_v13 = vunpack.i.h.bf16 %v3677_v20  ;;  %v3678_v54 = vunpack.i.l.bf16 %v3677_v20  ;;  %v4759_v41 = vpop.permute.xlu1 %3731  ;;  %v3638_v56 = vunpack.i.l.bf16 %v4616_v23  ;;  %v3729_v52 = vunpack.i.h.bf16 %v4762_v38 }
 0x359   : > { %2212 = vmatpush.msra.mxu1 %v2156_v37  ;;  %v3728_v32 = vunpack.i.l.bf16 %v4762_v38  ;;  %v3734_v31 = vunpack.i.h.bf16 %v4759_v41  ;;  %v3733_v20 = vunpack.i.l.bf16 %v4759_v41  ;;  %v3579_v37 = vunpack.i.h.bf16 %v4481_v33  ;;  %v3113_v41 = vld [vmem:[%s4985_s4 + $0x38] sm:$0xff] }
 0x35a   : > { %v2161_v46 = vsel %vm823_vm9, %v3674_v22, %v3678_v54  ;;  %v2162_v1 = vsel %vm823_vm9, %v3678_v54, %v3679_v13  ;;  %v2158_v23 = vsel %vm823_vm9, %v3684_v4, %v3638_v56  ;;  %v2297_v22 = vsel %vm967_vm7, %v3569_v35, %v3588_v51 }
 0x35b   : > { %2213 = vmatpush.msra.mxu1 %v2152_v11  ;;  %2231 = vmatpush.msra.mxu2 %v2161_v46  ;;  %v2433_v4 = vsel %vm1105_vm8, %v3573_v8, %v3574_v50  ;;  %v2570_v5 = vsel %vm1240_vm11, %v3733_v20, %v3734_v31  ;;  %v2567_v11 = vsel %vm1240_vm11, %v3578_v9, %v3579_v37  ;;  %v3723_v33 = vunpack.i.l.bf16 %v4726_v62 }
 0x35c   : > { %2251 = vmatpush.msra.mxu3 %v2162_v1  ;;  %v3583_v9 = vunpack.i.l.bf16 %v4530_v55 }
 0x35d   : > { %2354 = vmatpush.msrb.mxu1 %v2303_v21  ;;  %2232 = vmatpush.msra.mxu2 %v2157_v27  ;;  %v3584_v21 = vunpack.i.h.bf16 %v4530_v55  ;;  %v3724_v27 = vunpack.i.h.bf16 %v4726_v62 }
 0x35e   : > { %2252 = vmatpush.msra.mxu3 %v2158_v23 }
 0x35f   : > { %2355 = vmatpush.msrb.mxu1 %v2299_v43  ;;  %v3697_v15 = vpop.permute.xlu0 %3696  ;;  %2233 = vmatpush.msra.mxu2 %v2153_v60  ;;  %v4805_v17 = vpop.permute.xlu2 %3746  ;;  %v3513_v43 = vunpack.i.l.bf16 %v4456_v30 }
 0x360   : > { %3095 = vmatmul.msk.f32.vlgmr.msra.gmra.mxu1 %vm405_vm10, %v4713_v61  ;;  %v3699_v49 = vunpack.i.h.bf16 %v3697_v15  ;;  %v3698_v53 = vunpack.i.l.bf16 %v3697_v15  ;;  %2253 = vmatpush.msra.mxu3 %v2154_v18  ;;  %v4791_v7 = vpop.permute.xlu1 %3741  ;;  %v3749_v54 = vunpack.i.h.bf16 %v4805_v17  ;;  %v2434_v18 = vsel %vm1105_vm8, %v3723_v33, %v3724_v27 }
 0x361   : > { %2356 = vmatpush.msrb.mxu1 %v2295_v3  ;;  %3096 = vmatmul.msk.f32.vlgmr.msra.gmra.mxu2 %vm405_vm10, %v4713_v61  ;;  %v2435_v3 = vsel %vm1105_vm8, %v3724_v27, %v3713_v19  ;;  %v2431_v51 = vsel %vm1105_vm8, %v3513_v43, %v3514_v57 }
 0x362   : > { %3097 = vmatmul.msk.f32.vlgmr.msra.gmra.mxu3 %vm405_vm10, %v4713_v61  ;;  %2374 = vmatpush.msrb.mxu2 %v2304_v63  ;;  %v2300_v16 = vsel %vm967_vm7, %v3694_v48, %v3698_v53  ;;  %v2301_v29 = vsel %vm967_vm7, %v3698_v53, %v3699_v49  ;;  %v3714_v61 = vunpack.i.h.bf16 %v4686_v45  ;;  %v3748_v48 = vunpack.i.l.bf16 %v4805_v17  ;;  %v3108_v45 = vld [vmem:[%s4985_s4 + $0x30] sm:$0xff] }
 0x363   : > { %2394 = vmatpush.msrb.mxu3 %v2305_v59  ;;  %v2701_v49 = vsel %vm1375_vm12, %v3583_v9, %v3584_v21  ;;  %v3744_v63 = vunpack.i.h.bf16 %v4791_v7 }
 0x364   : > { %2375 = vmatpush.msrb.mxu2 %v2300_v16  ;;  %v2436_v24 = vsel %vm1105_vm8, %v3713_v19, %v3714_v61  ;;  %v2707_v23 = vsel %vm1375_vm12, %v3748_v48, %v3749_v54  ;;  %v3743_v16 = vunpack.i.l.bf16 %v4791_v7 }
 0x365   : > { %2395 = vmatpush.msrb.mxu3 %v2301_v29 }
 0x366   : > { %2376 = vmatpush.msrb.mxu2 %v2296_v44  ;;  %v3518_v44 = vunpack.i.l.bf16 %v4484_v42  ;;  %v309_v42 = vld [vmem:[%s4987_s6] sm:$0xff] }
 0x367   : > { %2396 = vmatpush.msrb.mxu3 %v2297_v22  ;;  %v4815_v58 = vpop.permute.xlu0 %3701  ;;  %2952 = vperm.xlu1 %3795, %v309_v42  }
 0x368   : > { %3100 = vmatmul.msk.f32.vlgmr.msrb.gmra.mxu1 %vm405_vm10, %v4748_v0  ;;  %2508 = vmatpush.msra.mxu2 %v2439_v6  ;;  %v4819_v40 = vpop.permute.xlu1 %3751  ;;  %v4837_v13 = vpop.permute.xlu2 %3766  ;;  %v2568_v6 = vsel %vm1240_vm11, %v3743_v16, %v3744_v63 }
 0x369   : > { %2528 = vmatpush.msra.mxu3 %v3709_v39  ;;  %3101 = vmatmul.msk.f32.vlgmr.msrb.gmra.mxu2 %vm405_vm10, %v4748_v0  ;;  %v3754_v56 = vunpack.i.h.bf16 %v4819_v40  ;;  %v3753_v46 = vunpack.i.l.bf16 %v4819_v40  ;;  %v3769_v60 = vunpack.i.h.bf16 %v4837_v13  ;;  %v3768_v15 = vunpack.i.l.bf16 %v4837_v13  ;;  %v3118_v40 = vld [vmem:[%s4985_s4 + $0x40] sm:$0xff] }
 0x36a   : > { %3102 = vmatmul.msk.f32.vlgmr.msrb.gmra.mxu3 %vm405_vm10, %v4748_v0  ;;  %2509 = vmatpush.msra.mxu2 %v2436_v24  ;;  %v2573_v0 = vsel %vm1240_vm11, %v3728_v32, %v3729_v52 }
 0x36b   : > { %2529 = vmatpush.msra.mxu3 %v3714_v61  ;;  %v2704_v62 = vsel %vm1375_vm12, %v3753_v46, %v3754_v56  ;;  %v2841_v30 = vsel %vm1510_vm13, %v3768_v15, %v3769_v60 }
 0x36c   : > { %2510 = vmatpush.msra.mxu2 %v2433_v4  ;;  %v3703_v4 = vunpack.i.l.bf16 %v4815_v58 }
 0x36d   : > { %2530 = vmatpush.msra.mxu3 %v3574_v50  ;;  %v2569_v50 = vsel %vm1240_vm11, %v3744_v63, %v3733_v20 }
 0x36e   : > { %2642 = vmatpush.msrb.mxu2 %v2573_v0 }
 0x36f   : > { %2662 = vmatpush.msrb.mxu3 %v3729_v52  ;;  %v3717_v8 = vpop.permute.xlu0 %3716 }
 0x370   : > { %2643 = vmatpush.msrb.mxu2 %v2570_v5  ;;  %v3719_v1 = vunpack.i.h.bf16 %v3717_v8  ;;  %v3718_v47 = vunpack.i.l.bf16 %v3717_v8  ;;  %v4852_v14 = vpop.permute.xlu1 %3761  ;;  %v4878_v53 = vpop.permute.xlu2 %3771 }
 0x371   : > { %2663 = vmatpush.msrb.mxu3 %v3734_v31  ;;  %3106 = vmatmul.msk.f32.vlgmr.msra.gmra.mxu2 %vm405_vm10, %v3103_v34  ;;  %v3774_v61 = vunpack.i.h.bf16 %v4878_v53  ;;  %v3764_v24 = vunpack.i.h.bf16 %v4852_v14  ;;  %v3763_v31 = vunpack.i.l.bf16 %v4852_v14 }
 0x372   : > { %2644 = vmatpush.msrb.mxu2 %v2567_v11  ;;  %3107 = vmatmul.msk.f32.vlgmr.msra.gmra.mxu3 %vm405_vm10, %v3103_v34  ;;  %v2437_v26 = vsel %vm1105_vm8, %v3718_v47, %v3719_v1  ;;  %v2438_v25 = vsel %vm1105_vm8, %v3719_v1, %v3708_v10 }
 0x373   : > { %2664 = vmatpush.msrb.mxu3 %v3579_v37  ;;  %2468 = vmatpush.msra.mxu0 %v2437_v26  ;;  %v2703_v5 = vsel %vm1375_vm12, %v3764_v24, %v3753_v46 }
 0x374   : > { %2776 = vmatpush.msra.mxu2 %v2707_v23  ;;  %2488 = vmatpush.msra.mxu1 %v2438_v25 }
 0x375   : > { %2796 = vmatpush.msra.mxu3 %v3749_v54  ;;  %2469 = vmatpush.msra.mxu0 %v2434_v18  ;;  %v2702_v54 = vsel %vm1375_vm12, %v3763_v31, %v3764_v24 }
 0x376   : > { %2777 = vmatpush.msra.mxu2 %v2704_v62  ;;  %2489 = vmatpush.msra.mxu1 %v2435_v3 }
 0x377   : > { %2797 = vmatpush.msra.mxu3 %v3754_v56  ;;  %v3737_v35 = vpop.permute.xlu0 %3736  ;;  %2470 = vmatpush.msra.mxu0 %v2431_v51 }
 0x378   : > { %2778 = vmatpush.msra.mxu2 %v2701_v49  ;;  %v3739_v59 = vunpack.i.h.bf16 %v3737_v35  ;;  %v3738_v39 = vunpack.i.l.bf16 %v3737_v35  ;;  %2490 = vmatpush.msra.mxu1 %v4470_v36  ;;  %v4888_v10 = vpop.permute.xlu1 %3776  ;;  %v3773_v36 = vunpack.i.l.bf16 %v4878_v53  ;;  %v3792_v11 = vpop.permute.xlu2 %3791 }
 0x379   : > { %2798 = vmatpush.msra.mxu3 %v3584_v21  ;;  %3104 = vmatmul.msk.f32.vlgmr.msra.gmra.mxu0 %vm405_vm10, %v3103_v34  ;;  %v3779_v57 = vunpack.i.h.bf16 %v4888_v10  ;;  %v3778_v29 = vunpack.i.l.bf16 %v4888_v10  ;;  %v3794_v47 = vunpack.i.h.bf16 %v3792_v11  ;;  %v3793_v55 = vunpack.i.l.bf16 %v3792_v11 }
 0x37a   : > { %3105 = vmatmul.msk.f32.vlgmr.msra.gmra.mxu1 %vm405_vm10, %v3103_v34  ;;  %3111 = vmatmul.msk.f32.vlgmr.msrb.gmra.mxu2 %vm405_vm10, %v3108_v45  ;;  %v2571_v7 = vsel %vm1240_vm11, %v3738_v39, %v3739_v59  ;;  %v2572_v19 = vsel %vm1240_vm11, %v3739_v59, %v3728_v32  ;;  %v2835_v38 = vsel %vm1510_vm13, %v3773_v36, %v3774_v61 }
 0x37b   : > { %3112 = vmatmul.msk.f32.vlgmr.msrb.gmra.mxu3 %vm405_vm10, %v3108_v45  ;;  %2910 = vmatpush.msrb.mxu2 %v2841_v30  ;;  %v2838_v22 = vsel %vm1510_vm13, %v3778_v29, %v3779_v57  ;;  %v2565_v32 = vsel %vm1240_vm11, %v3518_v44, %v3519_v12  ;;  %v3704_v12 = vunpack.i.h.bf16 %v4815_v58  ;;  %v2834_v23 = vsel %vm1510_vm13, %v3794_v47, %v3773_v36 }
 0x37c   : > { %2930 = vmatpush.msrb.mxu3 %v3769_v60  ;;  %2602 = vmatpush.msrb.mxu0 %v2571_v7 }
 0x37d   : > { %2622 = vmatpush.msrb.mxu1 %v2572_v19  ;;  %2911 = vmatpush.msrb.mxu2 %v2838_v22  ;;  %v2699_v8 = vsel %vm1375_vm12, %v3703_v4, %v3704_v12  ;;  %v2700_v17 = vsel %vm1375_vm12, %v3704_v12, %v3583_v9  ;;  %v2833_v9 = vsel %vm1510_vm13, %v3793_v55, %v3794_v47 }
 0x37e   : > { %2931 = vmatpush.msrb.mxu3 %v3779_v57  ;;  %2603 = vmatpush.msrb.mxu0 %v2568_v6 }
 0x37f   : > { %2623 = vmatpush.msrb.mxu1 %v2569_v50  ;;  %v3757_v52 = vpop.permute.xlu0 %3756  ;;  %2912 = vmatpush.msrb.mxu2 %v2835_v38 }
 0x380   : > { %2932 = vmatpush.msrb.mxu3 %v3774_v61  ;;  %v3759_v20 = vunpack.i.h.bf16 %v3757_v52  ;;  %v3758_v37 = vunpack.i.l.bf16 %v3757_v52  ;;  %2604 = vmatpush.msrb.mxu0 %v2565_v32  ;;  %v3787_v58 = vpop.permute.xlu1 %3786 }
 0x381   : > { %2624 = vmatpush.msrb.mxu1 %v4493_v28  ;;  %3109 = vmatmul.msk.f32.vlgmr.msrb.gmra.mxu0 %vm405_vm10, %v3108_v45  ;;  %v3789_v34 = vunpack.i.h.bf16 %v3787_v58  ;;  %v3788_v56 = vunpack.i.l.bf16 %v3787_v58 }
 0x382   : > { %3110 = vmatmul.msk.f32.vlgmr.msrb.gmra.mxu1 %vm405_vm10, %v3108_v45  ;;  %3116 = vmatmul.msk.f32.vlgmr.msra.gmra.mxu2 %vm405_vm10, %v3113_v41  ;;  %v2705_v0 = vsel %vm1375_vm12, %v3758_v37, %v3759_v20  ;;  %v2706_v28 = vsel %vm1375_vm12, %v3759_v20, %v3748_v48 }
 0x383   : > { %3117 = vmatmul.msk.f32.vlgmr.msra.gmra.mxu3 %vm405_vm10, %v3113_v41  ;;  %2736 = vmatpush.msra.mxu0 %v2705_v0  ;;  %v2836_v27 = vsel %vm1510_vm13, %v3788_v56, %v3789_v34  ;;  %v2837_v33 = vsel %vm1510_vm13, %v3789_v34, %v3778_v29 }
 0x384   : > { %2756 = vmatpush.msra.mxu1 %v2706_v28 }
 0x385   : > { %2737 = vmatpush.msra.mxu0 %v2702_v54 }
 0x386   : > { %2757 = vmatpush.msra.mxu1 %v2703_v5 }
 0x387   : > { %v3782_v48 = vpop.permute.xlu0 %3781  ;;  %2738 = vmatpush.msra.mxu0 %v2699_v8 }
 0x388   : > { %2758 = vmatpush.msra.mxu1 %v2700_v17  ;;  %v3784_v46 = vunpack.i.h.bf16 %v3782_v48  ;;  %v3783_v1 = vunpack.i.l.bf16 %v3782_v48 }
 0x389   : > { %3114 = vmatmul.msk.f32.vlgmr.msra.gmra.mxu0 %vm405_vm10, %v3113_v41 }
 0x38a   : > { %3115 = vmatmul.msk.f32.vlgmr.msra.gmra.mxu1 %vm405_vm10, %v3113_v41  ;;  %3121 = vmatmul.msk.f32.vlgmr.msrb.gmra.mxu2 %vm405_vm10, %v3118_v40  ;;  %v2839_v14 = vsel %vm1510_vm13, %v3783_v1, %v3784_v46  ;;  %v2840_v21 = vsel %vm1510_vm13, %v3784_v46, %v3768_v15 }
 0x38b   : > { %3122 = vmatmul.msk.f32.vlgmr.msrb.gmra.mxu3 %vm405_vm10, %v3118_v40  ;;  %2870 = vmatpush.msrb.mxu0 %v2839_v14 }
 0x38c   : > { %2890 = vmatpush.msrb.mxu1 %v2840_v21 }
 0x38d   : > { %2871 = vmatpush.msrb.mxu0 %v2836_v27 }
 0x38e   : > { %2891 = vmatpush.msrb.mxu1 %v2837_v33 }
 0x38f   : > { %2872 = vmatpush.msrb.mxu0 %v2833_v9  ;;  %v1756_v13 = vpop.f32.mrf.mxu0 }
 0x390   : > { %2892 = vmatpush.msrb.mxu1 %v2834_v23 }
 0x391   : > { %3119 = vmatmul.msk.f32.vlgmr.msrb.gmra.mxu0 %vm405_vm10, %v3118_v40 }
 0x392   : > { %3120 = vmatmul.msk.f32.vlgmr.msrb.gmra.mxu1 %vm405_vm10, %v3118_v40 }
 0x397   : > { %v1884_v62 = vpop.f32.mrf.mxu0 }
 0x398   : > { %v1885_v7 = vadd.f32 %v1884_v62, %v1756_v13 }
 0x39f   : > { %v2014_v3 = vpop.f32.mrf.mxu0 }
 0x3a0   : > { %v2077_v50 = vadd.f32 %v2014_v3, %v1885_v7 }
 0x3c3   : > { %v1776_v26 = vpop.f32.mrf.mxu1 }
 0x3c7   : > { %v2195_v51 = vpop.f32.mrf.mxu0 }
 0x3c8   : > { %v2258_v31 = vadd.f32 %v2195_v51, %v2077_v50 }
 0x3c9   : > { %v1816_v25 = vpop.f32.mrf.mxu3 }
 0x3ca   : > { %v1796_v43 = vpop.f32.mrf.mxu2 }
 0x3cd   : > { %v1904_v60 = vpop.f32.mrf.mxu1 }
 0x3ce   : > { %v1905_v32 = vadd.f32 %v1904_v60, %v1776_v26 }
 0x3cf   : > { %v2338_v16 = vpop.f32.mrf.mxu0 }
 0x3d0   : > { %v2401_v8 = vadd.f32 %v2338_v16, %v2258_v31  ;;  %v3798_v16 = vld [vmem:[%s3882_s10] sm:$0xff] }
 0x3d1   : > { %v1944_v15 = vpop.f32.mrf.mxu3 }
 0x3d2   : > { %v1945_v38 = vadd.f32 %v1944_v15, %v1816_v25 }
 0x3d3   : > { %v1924_v18 = vpop.f32.mrf.mxu2 }
 0x3d4   : > { %v1925_v52 = vadd.f32 %v1924_v18, %v1796_v43  ;;  %v2944_v43 = vpop.permute.xlu0 %2943 }
 0x3d5   : > { %v2034_v49 = vpop.f32.mrf.mxu1 }
 0x3d6   : > { %v2078_v20 = vadd.f32 %v2034_v49, %v1905_v32 }
 0x3d9   : > { %v2074_v35 = vpop.f32.mrf.mxu3  ;;  %v2953_v15 = vpop.permute.xlu1 %2952 }
 0x3da   : > { %v2080_v41 = vadd.f32 %v2074_v35, %v1945_v38 }
 0x3db   : > { %v2054_v53 = vpop.f32.mrf.mxu2 }
 0x3dc   : > { %v2079_v24 = vadd.f32 %v2054_v53, %v1925_v52 }
 0x3dd   : > { %v2215_v45 = vpop.f32.mrf.mxu1 }
 0x3de   : > { %v2259_v12 = vadd.f32 %v2215_v45, %v2078_v20 }
 0x3e4   : > { %v2235_v63 = vpop.f32.mrf.mxu2 }
 0x3e5   : > { %v2255_v59 = vpop.f32.mrf.mxu3  ;;  %v2358_v30 = vpop.f32.mrf.mxu1  ;;  %v2260_v37 = vadd.f32 %v2235_v63, %v2079_v24 }
 0x3e6   : > { %v2261_v42 = vadd.f32 %v2255_v59, %v2080_v41  ;;  %v2402_v17 = vadd.f32 %v2358_v30, %v2259_v12  ;;  %v3797_v59 = vld [vmem:[%s3882_s10 + $0x10] sm:$0xff] }
 0x3ec   : > { %v2378_v39 = vpop.f32.mrf.mxu2 }
 0x3ed   : > { %v2398_v10 = vpop.f32.mrf.mxu3  ;;  %v2403_v28 = vadd.f32 %v2378_v39, %v2260_v37 }
 0x3ee   : > { %v2404_v54 = vadd.f32 %v2398_v10, %v2261_v42 }
 0x3f4   : > { %v2512_v57 = vpop.f32.mrf.mxu2 }
 0x3f5   : > { %v2532_v29 = vpop.f32.mrf.mxu3  ;;  %v2537_v11 = vadd.f32 %v2512_v57, %v2403_v28  ;;  %v3799_v57 = vld [vmem:[%s3882_s10 + $0x8] sm:$0xff] }
 0x3f6   : > { %v2472_v61 = vpop.f32.mrf.mxu0  ;;  %v2538_v48 = vadd.f32 %v2532_v29, %v2404_v54 }
 0x3f7   : > { %v2492_v36 = vpop.f32.mrf.mxu1  ;;  %v2535_v40 = vadd.f32 %v2472_v61, %v2401_v8 }
 0x3f8   : > { %v2536_v34 = vadd.f32 %v2492_v36, %v2402_v17 }
 0x3fd   : > { %v2646_v19 = vpop.f32.mrf.mxu2 }
 0x3fe   : > { %v2666_v44 = vpop.f32.mrf.mxu3  ;;  %v2606_v22 = vpop.f32.mrf.mxu0  ;;  %v2671_v56 = vadd.f32 %v2646_v19, %v2537_v11 }
 0x3ff   : > { %v2626_v6 = vpop.f32.mrf.mxu1  ;;  %v2672_v46 = vadd.f32 %v2666_v44, %v2538_v48  ;;  %v2669_v1 = vadd.f32 %v2606_v22, %v2535_v40 }
 0x400   : > { %v2670_v47 = vadd.f32 %v2626_v6, %v2536_v34 }
 0x405   : > { %v2780_v4 = vpop.f32.mrf.mxu2 }
 0x406   : > { %v2800_v0 = vpop.f32.mrf.mxu3  ;;  %v2740_v5 = vpop.f32.mrf.mxu0  ;;  %v2805_v55 = vadd.f32 %v2780_v4, %v2671_v56 }
 0x407   : > { %v2760_v58 = vpop.f32.mrf.mxu1  ;;  %v2806_v14 = vadd.f32 %v2800_v0, %v2672_v46  ;;  %v2803_v21 = vadd.f32 %v2740_v5, %v2669_v1 }
 0x408   : > { %v2804_v27 = vadd.f32 %v2760_v58, %v2670_v47 }
 0x40d   : > { %v2914_v33 = vpop.f32.mrf.mxu2 }
 0x40e   : > { %v2934_v9 = vpop.f32.mrf.mxu3  ;;  %v2939_v23 = vadd.f32 %v2914_v33, %v2805_v55  ;;  %v2874_v26 = vpop.f32.mrf.mxu0 }
 0x40f   : > { %v2940_v13 = vadd.f32 %v2934_v9, %v2806_v14  ;;  %v2894_v25 = vpop.f32.mrf.mxu1  ;;  %v2937_v62 = vadd.f32 %v2874_v26, %v2803_v21 }
 0x410   : > { %v2938_v60 = vadd.f32 %v2894_v25, %v2804_v27  ;;  %v2948_v18 = vmul.f32 %v2944_v43, %v2939_v23 }
 0x411   : > { %v2949_v3 = vmul.f32 %v2944_v43, %v2940_v13  ;;  %v2946_v49 = vmul.f32 %v2944_v43, %v2937_v62 }
 0x412   : > { %v2947_v35 = vmul.f32 %v2944_v43, %v2938_v60  ;;  %v2957_v53 = vadd.f32 %v2953_v15, %v2948_v18 }
 0x413   : > { %v2958_v51 = vadd.f32 %v2953_v15, %v2949_v3  ;;  %v2955_v45 = vadd.f32 %v2953_v15, %v2946_v49 }
 0x414   : > { %v2956_v63 = vadd.f32 %v2953_v15, %v2947_v35  ;;  %v2961_v39 = vadd.f32 %v3797_v59, %v2957_v53 }
 0x415   : > { %v2962_v10 = vadd.f32 %v2958_v51, %v3888_v2  ;;  %v2959_v30 = vadd.f32 %v3798_v16, %v2955_v45 }
 0x416   : > { %v2960_v29 = vadd.f32 %v3799_v57, %v2956_v63  ;;  %v2965_v61 = vmax.f32 %v2961_v39, 0.0 }
 0x417   : > { %v2963_v36 = vmax.f32 %v2959_v30, 0.0  ;;  %v2966_v19 = vmax.f32 %v2962_v10, 0.0 }
 0x418   : > { %v2964_v7 = vmax.f32 %v2960_v29, 0.0  ;;  %2969 = vst [vmem:[%s305_s17 + $0x10] sm:$0xff] %v2965_v61 }
 0x419   : > { %2967 = vst [vmem:[%s305_s17] sm:$0xff] %v2963_v36 }
 0x41a   : > { %2968 = vst [vmem:[%s305_s17 + $0x8] sm:$0xff] %v2964_v7 }
 0x41b   : > { %2970 = vst.msk [vmem:[%s305_s17 + $0x18] sm:$0xff] %vm314_vm1, %v2966_v19 }
 0x41c PF: > { %s18_s27 = sadd.s32 1, %s3806_s27  }
 0x41d   : > { %p15_p4 = scmp.ge.s32.totalorder %s18_s27, 4  }
 0x41f   :  { %17 = sbr.rel (!%p15_p4) target bundleno = 1 (0x1), region = 98 }

</bundles_post_ra>
